<compile_context>
chip_gen: v7x
topology: tpu7x:2x2x1
jax: 0.10.0
libtpu: 0.0.40
codegen_flags: <defaults>
</compile_context>

<pallas_src>
import functools
import math

import jax
import jax.numpy as jnp
from jax.experimental import pallas as pl
from jax.experimental.pallas import tpu as pltpu


# ----------------------------- in-kernel helpers -----------------------------

def _layernorm(x, g, b, eps=1e-5):
    mu = jnp.mean(x, axis=-1, keepdims=True)
    xc = x - mu
    var = jnp.mean(xc * xc, axis=-1, keepdims=True)
    return xc * jax.lax.rsqrt(var + eps) * g + b


# --------------------------- fused transformer kernel ------------------------
# grid = (num_layers,).  Activation state lives in a VMEM scratch across layers.
#
# w_mats rows: 0 sa_q, 1 sa_k, 2 sa_v, 3 sa_o, 4 ca_q, 5 ca_k, 6 ca_v, 7 ca_o,
#              8 fc1, 9 fc2                               (each (E, E), bf16)
# vec    rows: 0-2 sa q/k/v bias, 3 sa o bias, 4-6 ca q/k/v bias, 7 ca o bias,
#              8 fc1 bias, 9 fc2 bias, 10-13 LN gains (ln0,ln1,ln2,last),
#              14-17 LN biases (ln0,ln1,ln2,last)          (each (E,), f32)

def _fused_transformer_kernel(emb_ref, img_ref, lnin_ref, causal_ref,
                              wmat_ref, vec_ref, wout_ref, bout_ref,
                              logits_ref, pred_ref, x_sc,
                              *, n_heads, embed_scale):
    l = pl.program_id(0)
    n_layers = pl.num_programs(0)
    H = n_heads
    B, T, E = emb_ref.shape
    Lk = img_ref.shape[1]
    dh = E // H

    # layer 0: embedding scale + input LayerNorm (dropout = identity, inference)
    @pl.when(l == 0)
    def _():
        e0 = emb_ref[...].reshape(B * T, E).astype(jnp.float32) * embed_scale
        x_sc[...] = _layernorm(e0, lnin_ref[0], lnin_ref[1])

    x = x_sc[...]                                   # (B*T, E) f32
    vec = vec_ref[0]                                # (18, E) f32
    causal = causal_ref[...]                        # (T, T) additive f32 mask

    def W(i):                                       # stream one (E, E) bf16 matrix
        return wmat_ref[0, i]

    def proj(h2d_bf16, wi, bi):                     # full-E matmul + lane-dense bias
        return jnp.dot(h2d_bf16, W(wi),
                       preferred_element_type=jnp.float32) + vec[bi]

    def split_heads(z2d, rows):                     # (B*rows, E) -> (H*B, rows, dh)
        z3 = z2d.reshape(B, rows, E)
        parts = [z3[:, :, i * dh:(i + 1) * dh] for i in range(H)]
        return jnp.concatenate(parts, axis=0)

    def merge_heads(ctx):                           # (H*B, T, dh) -> (B*T, E)
        parts = [ctx[i * B:(i + 1) * B] for i in range(H)]
        return jnp.concatenate(parts, axis=-1).reshape(B * T, E)

    def attend(q2d, k2d, v2d, rows_kv, wo_i, bo_i, bias):
        qh = split_heads(q2d * jnp.float32(dh ** -0.5), T).astype(jnp.bfloat16)
        kh = split_heads(k2d, rows_kv).astype(jnp.bfloat16)
        vh = split_heads(v2d, rows_kv).astype(jnp.bfloat16)
        s = jnp.einsum('brd,bsd->brs', qh, kh,
                       preferred_element_type=jnp.float32)       # (H*B, T, S)
        if bias is not None:
            s = s + bias[None]
        m = jnp.max(s, axis=-1, keepdims=True)
        p = jnp.exp(s - m)
        p = p * pl.reciprocal(jnp.sum(p, axis=-1, keepdims=True), approx=True)
        ctx = jnp.einsum('brs,bsd->brd', p.astype(jnp.bfloat16), vh,
                         preferred_element_type=jnp.float32)     # (H*B, T, dh)
        c2d = merge_heads(ctx).astype(jnp.bfloat16)
        return jnp.dot(c2d, W(wo_i),
                       preferred_element_type=jnp.float32) + vec[bo_i]

    # ---- masked self-attention ----
    res = x
    h = _layernorm(x, vec[10], vec[14]).astype(jnp.bfloat16)
    x = res + attend(proj(h, 0, 0), proj(h, 1, 1), proj(h, 2, 2),
                     T, 3, 3, causal)

    # ---- conditional (cross) attention over image features ----
    res = x
    h = _layernorm(x, vec[11], vec[15]).astype(jnp.bfloat16)
    img2d = img_ref[...].reshape(B * Lk, E)                      # bf16
    x = res + attend(proj(h, 4, 4), proj(img2d, 5, 5), proj(img2d, 6, 6),
                     Lk, 7, 7, None)

    # ---- feed-forward ----
    res = x
    h = _layernorm(x, vec[12], vec[16]).astype(jnp.bfloat16)
    h = jnp.dot(h, W(8), preferred_element_type=jnp.float32) + vec[8]
    h = jnp.maximum(h, 0.0).astype(jnp.bfloat16)
    h = jnp.dot(h, W(9), preferred_element_type=jnp.float32) + vec[9]
    x = res + h

    x = _layernorm(x, vec[13], vec[17])             # last_ln (per layer, as in ref)
    x_sc[...] = x                                   # carry state to next layer

    # ---- fused vocab projection + argmax on the final layer step ----
    @pl.when(l == n_layers - 1)
    def _():
        logits = jnp.dot(x.astype(jnp.bfloat16), wout_ref[...],
                         preferred_element_type=jnp.float32) + bout_ref[0]
        logits_ref[...] = logits
        col = jax.lax.broadcasted_iota(jnp.int32, logits.shape, 1)
        mx = jnp.max(logits, axis=-1, keepdims=True)
        pred_ref[...] = jnp.min(
            jnp.where(logits == mx, col, jnp.int32(2 ** 30)),
            axis=-1, keepdims=True)


def fused_transformer(emb, img, causal, params, *, n_heads, embed_scale):
    B, T, E = emb.shape
    L = img.shape[1]
    NL = params['w_mats'].shape[0]
    Vp = params['w_out'].shape[1]

    kernel = functools.partial(_fused_transformer_kernel,
                               n_heads=n_heads, embed_scale=embed_scale)
    return pl.pallas_call(
        kernel,
        out_shape=(jax.ShapeDtypeStruct((B * T, Vp), jnp.float32),
                   jax.ShapeDtypeStruct((B * T, 1), jnp.int32)),
        grid=(NL,),
        in_specs=[
            pl.BlockSpec((B, T, E), lambda l: (0, 0, 0)),       # emb (resident)
            pl.BlockSpec((B, L, E), lambda l: (0, 0, 0)),       # img (resident)
            pl.BlockSpec((2, E), lambda l: (0, 0)),             # ln_in
            pl.BlockSpec((T, T), lambda l: (0, 0)),             # causal mask
            pl.BlockSpec((1, 10, E, E), lambda l: (l, 0, 0, 0)),  # per-layer matrices
            pl.BlockSpec((1, 18, E), lambda l: (l, 0, 0)),        # per-layer vectors
            pl.BlockSpec((E, Vp), lambda l: (0, 0)),            # output projection
            pl.BlockSpec((1, Vp), lambda l: (0, 0)),            # output bias
        ],
        out_specs=(pl.BlockSpec((B * T, Vp), lambda l: (0, 0)),
                   pl.BlockSpec((B * T, 1), lambda l: (0, 0))),
        scratch_shapes=[pltpu.VMEM((B * T, E), jnp.float32)],
        compiler_params=pltpu.CompilerParams(
            dimension_semantics=("arbitrary",),
            vmem_limit_bytes=48 * 1024 * 1024),
    )(emb, img, params['ln_in'], causal, params['w_mats'], params['vec'],
      params['w_out'], params['b_out'])


# ------------------------------- parameters ----------------------------------

def xavier_uniform(key, out_d, in_d):
    limit = math.sqrt(6.0 / (in_d + out_d))
    return jax.random.uniform(key, (out_d, in_d), jnp.float32, -limit, limit)


def init_params(key, *, vocab_size, embed_size, num_layers, n_heads):
    E, V = embed_size, vocab_size
    keys = jax.random.split(key, 2 + num_layers)

    emb = (E ** -0.5) * jax.random.normal(keys[0], (V, E), jnp.float32)
    emb = emb.at[V - 1].set(0.0)                      # padding_idx row

    Vp = max(128, ((V - 1 + 127) // 128) * 128)       # lane-dense padded vocab
    w_out = xavier_uniform(keys[1], V - 1, E).T       # (E, V-1) = torch weight.T
    w_out = jnp.pad(w_out, ((0, 0), (0, Vp - (V - 1)))).astype(jnp.bfloat16)
    b_out = jnp.concatenate(
        [jnp.zeros((V - 1,), jnp.float32),
         jnp.full((Vp - (V - 1),), -1e30, jnp.float32)]).reshape(1, Vp)

    w_mats, vec = [], []
    for li in range(num_layers):
        lk = jax.random.split(keys[2 + li], 6)
        sa = xavier_uniform(lk[0], 3 * E, E)          # self-attn in_proj (3E, E)
        ca = xavier_uniform(lk[1], 3 * E, E)          # cross-attn in_proj
        sa_o = xavier_uniform(lk[2], E, E)
        ca_o = xavier_uniform(lk[3], E, E)
        fc1 = xavier_uniform(lk[4], E, E)
        fc2 = xavier_uniform(lk[5], E, E)
        # torch Linear is y = x @ W.T + b -> store transposed for x @ w.
        w_mats.append(jnp.stack([sa[:E].T, sa[E:2 * E].T, sa[2 * E:].T, sa_o.T,
                                 ca[:E].T, ca[E:2 * E].T, ca[2 * E:].T, ca_o.T,
                                 fc1.T, fc2.T]))
        vec.append(jnp.concatenate([jnp.zeros((10, E), jnp.float32),   # all biases = 0
                                    jnp.ones((4, E), jnp.float32),     # LN gains
                                    jnp.zeros((4, E), jnp.float32)],   # LN biases
                                   axis=0))

    return {
        'embed': emb,                                             # (V, E) f32
        'ln_in': jnp.stack([jnp.ones((E,), jnp.float32),
                            jnp.zeros((E,), jnp.float32)]),       # (2, E)
        'w_mats': jnp.stack(w_mats).astype(jnp.bfloat16),         # (NL, 10, E, E)
        'vec': jnp.stack(vec),                                    # (NL, 18, E) f32
        'w_out': w_out,                                           # (E, Vp) bf16
        'b_out': b_out,                                           # (1, Vp) f32
    }


# -------------------------------- forward ------------------------------------

def transformer_forward(captions, img_features, params, *, n_heads):
    B, T = captions.shape
    V, E = params['embed'].shape
    embed_scale = math.sqrt(E)

    # img_features: (B, E, L) -> permute(0, 2, 1) as in PyTorch -> (B, L, E)
    img = jnp.transpose(img_features, (0, 2, 1)).astype(jnp.bfloat16)
    # NOTE: the reference calls layer_norms_in[1](img_features) and discards the
    # result, so it is skipped (no effect on outputs).
    emb = jnp.take(params['embed'], captions, axis=0)             # (B, T, E) gather (glue)

    # Additive causal mask, built once host-side, fetched once (constant index_map).
    row = jnp.arange(T, dtype=jnp.int32)[:, None]
    col = jnp.arange(T, dtype=jnp.int32)[None, :]
    causal = jnp.where(col > row, jnp.float32(-1e30), jnp.float32(0.0))

    logits_pad, pred = fused_transformer(emb, img, causal, params,
                                         n_heads=n_heads, embed_scale=embed_scale)
    logits = logits_pad[:, :V - 1].reshape(B, T, V - 1)
    return logits, pred.reshape(B, T)


if __name__ == "__main__":
    B, T = 2, 8          # batch, caption length
    E = 32               # embed_size
    V = 33               # vocab_size (final projection is to V-1 = 32)
    L = 16               # number of image feature locations
    H = 4                # attention heads
    NUM_LAYERS = 2

    key = jax.random.PRNGKey(0)
    kp, kc, ki = jax.random.split(key, 3)
    params = init_params(kp, vocab_size=V, embed_size=E,
                         num_layers=NUM_LAYERS, n_heads=H)
    captions = jax.random.randint(kc, (B, T), 0, V, dtype=jnp.int32)
    img_features = jax.random.normal(ki, (B, E, L), jnp.float32)  # (B, embed, locations)

    logits, predicted = transformer_forward(captions, img_features, params, n_heads=H)
    jax.block_until_ready((logits, predicted))
    assert logits.shape == (B, T, V - 1)
    assert predicted.shape == (B, T)
    print("KERNEL_OK")
</pallas_src>

<mosaic_0001>
module attributes {stable_mosaic.version = 11 : i64} {
  func.func @_fused_transformer_kernel(%arg0: i32, %arg1: memref<2x8x32xf32, #tpu.memory_space<vmem>>, %arg2: memref<2x16x32xbf16, #tpu.memory_space<vmem>>, %arg3: memref<2x32xf32, #tpu.memory_space<vmem>>, %arg4: memref<8x8xf32, #tpu.memory_space<vmem>>, %arg5: memref<1x10x32x32xbf16, #tpu.memory_space<vmem>>, %arg6: memref<1x18x32xf32, #tpu.memory_space<vmem>>, %arg7: memref<32x128xbf16, #tpu.memory_space<vmem>>, %arg8: memref<1x128xf32, #tpu.memory_space<vmem>>, %arg9: memref<16x128xf32, #tpu.memory_space<vmem>>, %arg10: memref<16x1xi32, #tpu.memory_space<vmem>>, %arg11: memref<16x32xf32, #tpu.memory_space<vmem>>) attributes {dimension_semantics = [#tpu.dimension_semantics<arbitrary>], iteration_bounds = array<i64: 2>, scalar_prefetch = 0 : i64, scratch_operands = 1 : i64, tpu.core_type = #tpu.core_type<tc>, window_params = [{pipeline_mode = #tpu.pipeline_mode<synchronous>, transform_indices = @transform_0, window_bounds = array<i64: 2, 8, 32>}, {pipeline_mode = #tpu.pipeline_mode<synchronous>, transform_indices = @transform_1, window_bounds = array<i64: 2, 16, 32>}, {pipeline_mode = #tpu.pipeline_mode<synchronous>, transform_indices = @transform_2, window_bounds = array<i64: 2, 32>}, {pipeline_mode = #tpu.pipeline_mode<synchronous>, transform_indices = @transform_3, window_bounds = array<i64: 8, 8>}, {transform_indices = @transform_4, window_bounds = array<i64: 1, 10, 32, 32>}, {transform_indices = @transform_5, window_bounds = array<i64: 1, 18, 32>}, {pipeline_mode = #tpu.pipeline_mode<synchronous>, transform_indices = @transform_6, window_bounds = array<i64: 32, 128>}, {pipeline_mode = #tpu.pipeline_mode<synchronous>, transform_indices = @transform_7, window_bounds = array<i64: 1, 128>}, {pipeline_mode = #tpu.pipeline_mode<synchronous>, transform_indices = @transform_8, window_bounds = array<i64: 16, 128>}, {pipeline_mode = #tpu.pipeline_mode<synchronous>, transform_indices = @transform_9, window_bounds = array<i64: 16, 1>}]} {
    %c0_i32 = arith.constant 0 : i32
    %0 = arith.cmpi eq, %arg0, %c0_i32 : i32
    %1 = arith.extui %0 : i1 to i32
    %c0_i32_0 = arith.constant 0 : i32
    %2 = arith.cmpi ne, %1, %c0_i32_0 : i32
    scf.if %2 {
      %c0_84 = arith.constant 0 : index
      %c0_85 = arith.constant 0 : index
      %c0_86 = arith.constant 0 : index
      %295 = vector.load %arg1[%c0_84, %c0_85, %c0_86] : memref<2x8x32xf32, #tpu.memory_space<vmem>>, vector<2x8x32xf32>
      %296 = vector.shape_cast %295 : vector<2x8x32xf32> to vector<16x32xf32>
      %cst_87 = arith.constant 5.65685415 : f32
      %297 = vector.broadcast %cst_87 : f32 to vector<16x32xf32>
      %298 = arith.mulf %296, %297 : vector<16x32xf32>
      %c0_88 = arith.constant 0 : index
      %c0_89 = arith.constant 0 : index
      %299 = vector.load %arg3[%c0_88, %c0_89] : memref<2x32xf32, #tpu.memory_space<vmem>>, vector<1x32xf32>
      %300 = vector.shape_cast %299 : vector<1x32xf32> to vector<32xf32>
      %c1_90 = arith.constant 1 : index
      %c0_91 = arith.constant 0 : index
      %301 = vector.load %arg3[%c1_90, %c0_91] : memref<2x32xf32, #tpu.memory_space<vmem>>, vector<1x32xf32>
      %302 = vector.shape_cast %301 : vector<1x32xf32> to vector<32xf32>
      %cst_92 = arith.constant dense<0.000000e+00> : vector<16xf32>
      %303 = vector.multi_reduction <add>, %298, %cst_92 [1] : vector<16x32xf32> to vector<16xf32>
      %304 = vector.shape_cast %303 : vector<16xf32> to vector<16x1xf32>
      %cst_93 = arith.constant 3.200000e+01 : f32
      %305 = vector.broadcast %cst_93 : f32 to vector<16x1xf32>
      %306 = arith.divf %304, %305 : vector<16x1xf32>
      %307 = vector.broadcast %306 : vector<16x1xf32> to vector<16x32xf32>
      %308 = arith.subf %298, %307 : vector<16x32xf32>
      %309 = arith.mulf %308, %308 : vector<16x32xf32>
      %cst_94 = arith.constant dense<0.000000e+00> : vector<16xf32>
      %310 = vector.multi_reduction <add>, %309, %cst_94 [1] : vector<16x32xf32> to vector<16xf32>
      %311 = vector.shape_cast %310 : vector<16xf32> to vector<16x1xf32>
      %cst_95 = arith.constant 3.200000e+01 : f32
      %312 = vector.broadcast %cst_95 : f32 to vector<16x1xf32>
      %313 = arith.divf %311, %312 : vector<16x1xf32>
      %cst_96 = arith.constant 9.99999974E-6 : f32
      %314 = vector.broadcast %cst_96 : f32 to vector<16x1xf32>
      %315 = arith.addf %313, %314 : vector<16x1xf32>
      %316 = math.rsqrt %315 : vector<16x1xf32>
      %317 = vector.broadcast %316 : vector<16x1xf32> to vector<16x32xf32>
      %318 = arith.mulf %308, %317 : vector<16x32xf32>
      %319 = vector.shape_cast %300 : vector<32xf32> to vector<1x32xf32>
      %320 = vector.broadcast %319 : vector<1x32xf32> to vector<16x32xf32>
      %321 = arith.mulf %318, %320 : vector<16x32xf32>
      %322 = vector.shape_cast %302 : vector<32xf32> to vector<1x32xf32>
      %323 = vector.broadcast %322 : vector<1x32xf32> to vector<16x32xf32>
      %324 = arith.addf %321, %323 : vector<16x32xf32>
      %c0_97 = arith.constant 0 : index
      %c0_98 = arith.constant 0 : index
      %325 = vector.load %arg11[%c0_97, %c0_98] : memref<16x32xf32, #tpu.memory_space<vmem>>, vector<16x32xf32>
      tpu.vector_store %arg11[%c0_97, %c0_98], %324 {strides = array<i32>} : memref<16x32xf32, #tpu.memory_space<vmem>>, vector<16x32xf32>,
    } else {
    }
    %c0 = arith.constant 0 : index
    %c0_1 = arith.constant 0 : index
    %3 = vector.load %arg11[%c0, %c0_1] : memref<16x32xf32, #tpu.memory_space<vmem>>, vector<16x32xf32>
    %c0_2 = arith.constant 0 : index
    %c0_3 = arith.constant 0 : index
    %c0_4 = arith.constant 0 : index
    %4 = vector.load %arg6[%c0_2, %c0_3, %c0_4] : memref<1x18x32xf32, #tpu.memory_space<vmem>>, vector<1x18x32xf32>
    %5 = vector.shape_cast %4 : vector<1x18x32xf32> to vector<18x32xf32>
    %c0_5 = arith.constant 0 : index
    %c0_6 = arith.constant 0 : index
    %6 = vector.load %arg4[%c0_5, %c0_6] : memref<8x8xf32, #tpu.memory_space<vmem>>, vector<8x8xf32>
    %7 = vector.extract_strided_slice %5 {offsets = [10, 0], sizes = [1, 32], strides = [1, 1]} : vector<18x32xf32> to vector<1x32xf32>
    %8 = vector.shape_cast %7 : vector<1x32xf32> to vector<32xf32>
    %9 = vector.extract_strided_slice %5 {offsets = [14, 0], sizes = [1, 32], strides = [1, 1]} : vector<18x32xf32> to vector<1x32xf32>
    %10 = vector.shape_cast %9 : vector<1x32xf32> to vector<32xf32>
    %cst = arith.constant dense<0.000000e+00> : vector<16xf32>
    %11 = vector.multi_reduction <add>, %3, %cst [1] : vector<16x32xf32> to vector<16xf32>
    %12 = vector.shape_cast %11 : vector<16xf32> to vector<16x1xf32>
    %cst_7 = arith.constant 3.200000e+01 : f32
    %13 = vector.broadcast %cst_7 : f32 to vector<16x1xf32>
    %14 = arith.divf %12, %13 : vector<16x1xf32>
    %15 = vector.broadcast %14 : vector<16x1xf32> to vector<16x32xf32>
    %16 = arith.subf %3, %15 : vector<16x32xf32>
    %17 = arith.mulf %16, %16 : vector<16x32xf32>
    %cst_8 = arith.constant dense<0.000000e+00> : vector<16xf32>
    %18 = vector.multi_reduction <add>, %17, %cst_8 [1] : vector<16x32xf32> to vector<16xf32>
    %19 = vector.shape_cast %18 : vector<16xf32> to vector<16x1xf32>
    %cst_9 = arith.constant 3.200000e+01 : f32
    %20 = vector.broadcast %cst_9 : f32 to vector<16x1xf32>
    %21 = arith.divf %19, %20 : vector<16x1xf32>
    %cst_10 = arith.constant 9.99999974E-6 : f32
    %22 = vector.broadcast %cst_10 : f32 to vector<16x1xf32>
    %23 = arith.addf %21, %22 : vector<16x1xf32>
    %24 = math.rsqrt %23 : vector<16x1xf32>
    %25 = vector.broadcast %24 : vector<16x1xf32> to vector<16x32xf32>
    %26 = arith.mulf %16, %25 : vector<16x32xf32>
    %27 = vector.shape_cast %8 : vector<32xf32> to vector<1x32xf32>
    %28 = vector.broadcast %27 : vector<1x32xf32> to vector<16x32xf32>
    %29 = arith.mulf %26, %28 : vector<16x32xf32>
    %30 = vector.shape_cast %10 : vector<32xf32> to vector<1x32xf32>
    %31 = vector.broadcast %30 : vector<1x32xf32> to vector<16x32xf32>
    %32 = arith.addf %29, %31 : vector<16x32xf32>
    %33 = arith.truncf %32 : vector<16x32xf32> to vector<16x32xbf16>
    %c0_11 = arith.constant 0 : index
    %c0_12 = arith.constant 0 : index
    %c0_13 = arith.constant 0 : index
    %c0_14 = arith.constant 0 : index
    %34 = vector.load %arg5[%c0_11, %c0_12, %c0_13, %c0_14] : memref<1x10x32x32xbf16, #tpu.memory_space<vmem>>, vector<1x1x32x32xbf16>
    %35 = vector.shape_cast %34 : vector<1x1x32x32xbf16> to vector<32x32xbf16>
    %cst_15 = arith.constant dense<0.000000e+00> : vector<16x32xf32>
    %36 = tpu.matmul %33, %35, %cst_15 {dimension_numbers = #tpu.dot_dimension_numbers<[1], [0], [0], [1], [0, 0, 1, 1], [], []>} : vector<16x32xbf16>, vector<32x32xbf16>, vector<16x32xf32> -> vector<16x32xf32>
    %37 = vector.extract_strided_slice %5 {offsets = [0, 0], sizes = [1, 32], strides = [1, 1]} : vector<18x32xf32> to vector<1x32xf32>
    %38 = vector.shape_cast %37 : vector<1x32xf32> to vector<32xf32>
    %39 = vector.shape_cast %38 : vector<32xf32> to vector<1x32xf32>
    %40 = vector.broadcast %39 : vector<1x32xf32> to vector<16x32xf32>
    %41 = arith.addf %36, %40 : vector<16x32xf32>
    %c0_16 = arith.constant 0 : index
    %c1 = arith.constant 1 : index
    %c0_17 = arith.constant 0 : index
    %c0_18 = arith.constant 0 : index
    %42 = vector.load %arg5[%c0_16, %c1, %c0_17, %c0_18] : memref<1x10x32x32xbf16, #tpu.memory_space<vmem>>, vector<1x1x32x32xbf16>
    %43 = vector.shape_cast %42 : vector<1x1x32x32xbf16> to vector<32x32xbf16>
    %cst_19 = arith.constant dense<0.000000e+00> : vector<16x32xf32>
    %44 = tpu.matmul %33, %43, %cst_19 {dimension_numbers = #tpu.dot_dimension_numbers<[1], [0], [0], [1], [0, 0, 1, 1], [], []>} : vector<16x32xbf16>, vector<32x32xbf16>, vector<16x32xf32> -> vector<16x32xf32>
    %45 = vector.extract_strided_slice %5 {offsets = [1, 0], sizes = [1, 32], strides = [1, 1]} : vector<18x32xf32> to vector<1x32xf32>
    %46 = vector.shape_cast %45 : vector<1x32xf32> to vector<32xf32>
    %47 = vector.shape_cast %46 : vector<32xf32> to vector<1x32xf32>
    %48 = vector.broadcast %47 : vector<1x32xf32> to vector<16x32xf32>
    %49 = arith.addf %44, %48 : vector<16x32xf32>
    %c0_20 = arith.constant 0 : index
    %c2 = arith.constant 2 : index
    %c0_21 = arith.constant 0 : index
    %c0_22 = arith.constant 0 : index
    %50 = vector.load %arg5[%c0_20, %c2, %c0_21, %c0_22] : memref<1x10x32x32xbf16, #tpu.memory_space<vmem>>, vector<1x1x32x32xbf16>
    %51 = vector.shape_cast %50 : vector<1x1x32x32xbf16> to vector<32x32xbf16>
    %cst_23 = arith.constant dense<0.000000e+00> : vector<16x32xf32>
    %52 = tpu.matmul %33, %51, %cst_23 {dimension_numbers = #tpu.dot_dimension_numbers<[1], [0], [0], [1], [0, 0, 1, 1], [], []>} : vector<16x32xbf16>, vector<32x32xbf16>, vector<16x32xf32> -> vector<16x32xf32>
    %53 = vector.extract_strided_slice %5 {offsets = [2, 0], sizes = [1, 32], strides = [1, 1]} : vector<18x32xf32> to vector<1x32xf32>
    %54 = vector.shape_cast %53 : vector<1x32xf32> to vector<32xf32>
    %55 = vector.shape_cast %54 : vector<32xf32> to vector<1x32xf32>
    %56 = vector.broadcast %55 : vector<1x32xf32> to vector<16x32xf32>
    %57 = arith.addf %52, %56 : vector<16x32xf32>
    %cst_24 = arith.constant 0.353553385 : f32
    %58 = vector.broadcast %cst_24 : f32 to vector<16x32xf32>
    %59 = arith.mulf %41, %58 : vector<16x32xf32>
    %60 = vector.shape_cast %59 : vector<16x32xf32> to vector<2x8x32xf32>
    %61 = vector.extract_strided_slice %60 {offsets = [0, 0, 0], sizes = [2, 8, 8], strides = [1, 1, 1]} : vector<2x8x32xf32> to vector<2x8x8xf32>
    %62 = vector.extract_strided_slice %60 {offsets = [0, 0, 8], sizes = [2, 8, 8], strides = [1, 1, 1]} : vector<2x8x32xf32> to vector<2x8x8xf32>
    %63 = vector.extract_strided_slice %60 {offsets = [0, 0, 16], sizes = [2, 8, 8], strides = [1, 1, 1]} : vector<2x8x32xf32> to vector<2x8x8xf32>
    %64 = vector.extract_strided_slice %60 {offsets = [0, 0, 24], sizes = [2, 8, 8], strides = [1, 1, 1]} : vector<2x8x32xf32> to vector<2x8x8xf32>
    %65 = tpu.concatenate %61, %62, %63, %64 in 0 : vector<2x8x8xf32>, vector<2x8x8xf32>, vector<2x8x8xf32>, vector<2x8x8xf32> -> vector<8x8x8xf32>
    %66 = arith.truncf %65 : vector<8x8x8xf32> to vector<8x8x8xbf16>
    %67 = vector.shape_cast %49 : vector<16x32xf32> to vector<2x8x32xf32>
    %68 = vector.extract_strided_slice %67 {offsets = [0, 0, 0], sizes = [2, 8, 8], strides = [1, 1, 1]} : vector<2x8x32xf32> to vector<2x8x8xf32>
    %69 = vector.extract_strided_slice %67 {offsets = [0, 0, 8], sizes = [2, 8, 8], strides = [1, 1, 1]} : vector<2x8x32xf32> to vector<2x8x8xf32>
    %70 = vector.extract_strided_slice %67 {offsets = [0, 0, 16], sizes = [2, 8, 8], strides = [1, 1, 1]} : vector<2x8x32xf32> to vector<2x8x8xf32>
    %71 = vector.extract_strided_slice %67 {offsets = [0, 0, 24], sizes = [2, 8, 8], strides = [1, 1, 1]} : vector<2x8x32xf32> to vector<2x8x8xf32>
    %72 = tpu.concatenate %68, %69, %70, %71 in 0 : vector<2x8x8xf32>, vector<2x8x8xf32>, vector<2x8x8xf32>, vector<2x8x8xf32> -> vector<8x8x8xf32>
    %73 = arith.truncf %72 : vector<8x8x8xf32> to vector<8x8x8xbf16>
    %74 = vector.shape_cast %57 : vector<16x32xf32> to vector<2x8x32xf32>
    %75 = vector.extract_strided_slice %74 {offsets = [0, 0, 0], sizes = [2, 8, 8], strides = [1, 1, 1]} : vector<2x8x32xf32> to vector<2x8x8xf32>
    %76 = vector.extract_strided_slice %74 {offsets = [0, 0, 8], sizes = [2, 8, 8], strides = [1, 1, 1]} : vector<2x8x32xf32> to vector<2x8x8xf32>
    %77 = vector.extract_strided_slice %74 {offsets = [0, 0, 16], sizes = [2, 8, 8], strides = [1, 1, 1]} : vector<2x8x32xf32> to vector<2x8x8xf32>
    %78 = vector.extract_strided_slice %74 {offsets = [0, 0, 24], sizes = [2, 8, 8], strides = [1, 1, 1]} : vector<2x8x32xf32> to vector<2x8x8xf32>
    %79 = tpu.concatenate %75, %76, %77, %78 in 0 : vector<2x8x8xf32>, vector<2x8x8xf32>, vector<2x8x8xf32>, vector<2x8x8xf32> -> vector<8x8x8xf32>
    %80 = arith.truncf %79 : vector<8x8x8xf32> to vector<8x8x8xbf16>
    "tpu.trace_start"() <{level = 10 : i32, message = "brd,bsd->brs"}> : () -> ()
    %cst_25 = arith.constant dense<0.000000e+00> : vector<8x8x8xf32>
    %81 = tpu.matmul %66, %73, %cst_25 {dimension_numbers = #tpu.dot_dimension_numbers<[2], [2], [1], [1], [0, 0, 0, 1, 1, 1], [0], [0]>} : vector<8x8x8xbf16>, vector<8x8x8xbf16>, vector<8x8x8xf32> -> vector<8x8x8xf32>
    "tpu.trace_stop"() : () -> ()
    %82 = vector.shape_cast %6 : vector<8x8xf32> to vector<1x8x8xf32>
    %83 = vector.broadcast %82 : vector<1x8x8xf32> to vector<8x8x8xf32>
    %84 = arith.addf %81, %83 : vector<8x8x8xf32>
    %cst_26 = arith.constant dense<0xFF800000> : vector<8x8xf32>
    %85 = vector.multi_reduction <maximumf>, %84, %cst_26 [2] : vector<8x8x8xf32> to vector<8x8xf32>
    %86 = vector.shape_cast %85 : vector<8x8xf32> to vector<8x8x1xf32>
    %87 = vector.broadcast %86 : vector<8x8x1xf32> to vector<8x8x8xf32>
    %88 = arith.subf %84, %87 : vector<8x8x8xf32>
    %89 = math.exp %88 : vector<8x8x8xf32>
    %cst_27 = arith.constant dense<0.000000e+00> : vector<8x8xf32>
    %90 = vector.multi_reduction <add>, %89, %cst_27 [2] : vector<8x8x8xf32> to vector<8x8xf32>
    %91 = vector.shape_cast %90 : vector<8x8xf32> to vector<8x8x1xf32>
    %92 = tpu.reciprocal %91 {approx = true} : vector<8x8x1xf32> -> vector<8x8x1xf32>
    %93 = vector.broadcast %92 : vector<8x8x1xf32> to vector<8x8x8xf32>
    %94 = arith.mulf %89, %93 : vector<8x8x8xf32>
    %95 = arith.truncf %94 : vector<8x8x8xf32> to vector<8x8x8xbf16>
    "tpu.trace_start"() <{level = 10 : i32, message = "brs,bsd->brd"}> : () -> ()
    %cst_28 = arith.constant dense<0.000000e+00> : vector<8x8x8xf32>
    %96 = tpu.matmul %95, %80, %cst_28 {dimension_numbers = #tpu.dot_dimension_numbers<[2], [1], [1], [2], [0, 0, 0, 1, 1, 2], [0], [0]>} : vector<8x8x8xbf16>, vector<8x8x8xbf16>, vector<8x8x8xf32> -> vector<8x8x8xf32>
    "tpu.trace_stop"() : () -> ()
    %97 = vector.extract_strided_slice %96 {offsets = [0, 0, 0], sizes = [2, 8, 8], strides = [1, 1, 1]} : vector<8x8x8xf32> to vector<2x8x8xf32>
    %98 = vector.extract_strided_slice %96 {offsets = [2, 0, 0], sizes = [2, 8, 8], strides = [1, 1, 1]} : vector<8x8x8xf32> to vector<2x8x8xf32>
    %99 = vector.extract_strided_slice %96 {offsets = [4, 0, 0], sizes = [2, 8, 8], strides = [1, 1, 1]} : vector<8x8x8xf32> to vector<2x8x8xf32>
    %100 = vector.extract_strided_slice %96 {offsets = [6, 0, 0], sizes = [2, 8, 8], strides = [1, 1, 1]} : vector<8x8x8xf32> to vector<2x8x8xf32>
    %101 = tpu.concatenate %97, %98, %99, %100 in 2 : vector<2x8x8xf32>, vector<2x8x8xf32>, vector<2x8x8xf32>, vector<2x8x8xf32> -> vector<2x8x32xf32>
    %102 = vector.shape_cast %101 : vector<2x8x32xf32> to vector<16x32xf32>
    %103 = arith.truncf %102 : vector<16x32xf32> to vector<16x32xbf16>
    %c0_29 = arith.constant 0 : index
    %c3 = arith.constant 3 : index
    %c0_30 = arith.constant 0 : index
    %c0_31 = arith.constant 0 : index
    %104 = vector.load %arg5[%c0_29, %c3, %c0_30, %c0_31] : memref<1x10x32x32xbf16, #tpu.memory_space<vmem>>, vector<1x1x32x32xbf16>
    %105 = vector.shape_cast %104 : vector<1x1x32x32xbf16> to vector<32x32xbf16>
    %cst_32 = arith.constant dense<0.000000e+00> : vector<16x32xf32>
    %106 = tpu.matmul %103, %105, %cst_32 {dimension_numbers = #tpu.dot_dimension_numbers<[1], [0], [0], [1], [0, 0, 1, 1], [], []>} : vector<16x32xbf16>, vector<32x32xbf16>, vector<16x32xf32> -> vector<16x32xf32>
    %107 = vector.extract_strided_slice %5 {offsets = [3, 0], sizes = [1, 32], strides = [1, 1]} : vector<18x32xf32> to vector<1x32xf32>
    %108 = vector.shape_cast %107 : vector<1x32xf32> to vector<32xf32>
    %109 = vector.shape_cast %108 : vector<32xf32> to vector<1x32xf32>
    %110 = vector.broadcast %109 : vector<1x32xf32> to vector<16x32xf32>
    %111 = arith.addf %106, %110 : vector<16x32xf32>
    %112 = arith.addf %3, %111 : vector<16x32xf32>
    %113 = vector.extract_strided_slice %5 {offsets = [11, 0], sizes = [1, 32], strides = [1, 1]} : vector<18x32xf32> to vector<1x32xf32>
    %114 = vector.shape_cast %113 : vector<1x32xf32> to vector<32xf32>
    %115 = vector.extract_strided_slice %5 {offsets = [15, 0], sizes = [1, 32], strides = [1, 1]} : vector<18x32xf32> to vector<1x32xf32>
    %116 = vector.shape_cast %115 : vector<1x32xf32> to vector<32xf32>
    %cst_33 = arith.constant dense<0.000000e+00> : vector<16xf32>
    %117 = vector.multi_reduction <add>, %112, %cst_33 [1] : vector<16x32xf32> to vector<16xf32>
    %118 = vector.shape_cast %117 : vector<16xf32> to vector<16x1xf32>
    %cst_34 = arith.constant 3.200000e+01 : f32
    %119 = vector.broadcast %cst_34 : f32 to vector<16x1xf32>
    %120 = arith.divf %118, %119 : vector<16x1xf32>
    %121 = vector.broadcast %120 : vector<16x1xf32> to vector<16x32xf32>
    %122 = arith.subf %112, %121 : vector<16x32xf32>
    %123 = arith.mulf %122, %122 : vector<16x32xf32>
    %cst_35 = arith.constant dense<0.000000e+00> : vector<16xf32>
    %124 = vector.multi_reduction <add>, %123, %cst_35 [1] : vector<16x32xf32> to vector<16xf32>
    %125 = vector.shape_cast %124 : vector<16xf32> to vector<16x1xf32>
    %cst_36 = arith.constant 3.200000e+01 : f32
    %126 = vector.broadcast %cst_36 : f32 to vector<16x1xf32>
    %127 = arith.divf %125, %126 : vector<16x1xf32>
    %cst_37 = arith.constant 9.99999974E-6 : f32
    %128 = vector.broadcast %cst_37 : f32 to vector<16x1xf32>
    %129 = arith.addf %127, %128 : vector<16x1xf32>
    %130 = math.rsqrt %129 : vector<16x1xf32>
    %131 = vector.broadcast %130 : vector<16x1xf32> to vector<16x32xf32>
    %132 = arith.mulf %122, %131 : vector<16x32xf32>
    %133 = vector.shape_cast %114 : vector<32xf32> to vector<1x32xf32>
    %134 = vector.broadcast %133 : vector<1x32xf32> to vector<16x32xf32>
    %135 = arith.mulf %132, %134 : vector<16x32xf32>
    %136 = vector.shape_cast %116 : vector<32xf32> to vector<1x32xf32>
    %137 = vector.broadcast %136 : vector<1x32xf32> to vector<16x32xf32>
    %138 = arith.addf %135, %137 : vector<16x32xf32>
    %139 = arith.truncf %138 : vector<16x32xf32> to vector<16x32xbf16>
    %c0_38 = arith.constant 0 : index
    %c0_39 = arith.constant 0 : index
    %c0_40 = arith.constant 0 : index
    %140 = vector.load %arg2[%c0_38, %c0_39, %c0_40] : memref<2x16x32xbf16, #tpu.memory_space<vmem>>, vector<2x16x32xbf16>
    %141 = vector.shape_cast %140 : vector<2x16x32xbf16> to vector<32x32xbf16>
    %c0_41 = arith.constant 0 : index
    %c4 = arith.constant 4 : index
    %c0_42 = arith.constant 0 : index
    %c0_43 = arith.constant 0 : index
    %142 = vector.load %arg5[%c0_41, %c4, %c0_42, %c0_43] : memref<1x10x32x32xbf16, #tpu.memory_space<vmem>>, vector<1x1x32x32xbf16>
    %143 = vector.shape_cast %142 : vector<1x1x32x32xbf16> to vector<32x32xbf16>
    %cst_44 = arith.constant dense<0.000000e+00> : vector<16x32xf32>
    %144 = tpu.matmul %139, %143, %cst_44 {dimension_numbers = #tpu.dot_dimension_numbers<[1], [0], [0], [1], [0, 0, 1, 1], [], []>} : vector<16x32xbf16>, vector<32x32xbf16>, vector<16x32xf32> -> vector<16x32xf32>
    %145 = vector.extract_strided_slice %5 {offsets = [4, 0], sizes = [1, 32], strides = [1, 1]} : vector<18x32xf32> to vector<1x32xf32>
    %146 = vector.shape_cast %145 : vector<1x32xf32> to vector<32xf32>
    %147 = vector.shape_cast %146 : vector<32xf32> to vector<1x32xf32>
    %148 = vector.broadcast %147 : vector<1x32xf32> to vector<16x32xf32>
    %149 = arith.addf %144, %148 : vector<16x32xf32>
    %c0_45 = arith.constant 0 : index
    %c5 = arith.constant 5 : index
    %c0_46 = arith.constant 0 : index
    %c0_47 = arith.constant 0 : index
    %150 = vector.load %arg5[%c0_45, %c5, %c0_46, %c0_47] : memref<1x10x32x32xbf16, #tpu.memory_space<vmem>>, vector<1x1x32x32xbf16>
    %151 = vector.shape_cast %150 : vector<1x1x32x32xbf16> to vector<32x32xbf16>
    %cst_48 = arith.constant dense<0.000000e+00> : vector<32x32xf32>
    %152 = tpu.matmul %141, %151, %cst_48 {dimension_numbers = #tpu.dot_dimension_numbers<[1], [0], [0], [1], [0, 0, 1, 1], [], []>} : vector<32x32xbf16>, vector<32x32xbf16>, vector<32x32xf32> -> vector<32x32xf32>
    %153 = vector.extract_strided_slice %5 {offsets = [5, 0], sizes = [1, 32], strides = [1, 1]} : vector<18x32xf32> to vector<1x32xf32>
    %154 = vector.shape_cast %153 : vector<1x32xf32> to vector<32xf32>
    %155 = vector.shape_cast %154 : vector<32xf32> to vector<1x32xf32>
    %156 = vector.broadcast %155 : vector<1x32xf32> to vector<32x32xf32>
    %157 = arith.addf %152, %156 : vector<32x32xf32>
    %c0_49 = arith.constant 0 : index
    %c6 = arith.constant 6 : index
    %c0_50 = arith.constant 0 : index
    %c0_51 = arith.constant 0 : index
    %158 = vector.load %arg5[%c0_49, %c6, %c0_50, %c0_51] : memref<1x10x32x32xbf16, #tpu.memory_space<vmem>>, vector<1x1x32x32xbf16>
    %159 = vector.shape_cast %158 : vector<1x1x32x32xbf16> to vector<32x32xbf16>
    %cst_52 = arith.constant dense<0.000000e+00> : vector<32x32xf32>
    %160 = tpu.matmul %141, %159, %cst_52 {dimension_numbers = #tpu.dot_dimension_numbers<[1], [0], [0], [1], [0, 0, 1, 1], [], []>} : vector<32x32xbf16>, vector<32x32xbf16>, vector<32x32xf32> -> vector<32x32xf32>
    %161 = vector.extract_strided_slice %5 {offsets = [6, 0], sizes = [1, 32], strides = [1, 1]} : vector<18x32xf32> to vector<1x32xf32>
    %162 = vector.shape_cast %161 : vector<1x32xf32> to vector<32xf32>
    %163 = vector.shape_cast %162 : vector<32xf32> to vector<1x32xf32>
    %164 = vector.broadcast %163 : vector<1x32xf32> to vector<32x32xf32>
    %165 = arith.addf %160, %164 : vector<32x32xf32>
    %cst_53 = arith.constant 0.353553385 : f32
    %166 = vector.broadcast %cst_53 : f32 to vector<16x32xf32>
    %167 = arith.mulf %149, %166 : vector<16x32xf32>
    %168 = vector.shape_cast %167 : vector<16x32xf32> to vector<2x8x32xf32>
    %169 = vector.extract_strided_slice %168 {offsets = [0, 0, 0], sizes = [2, 8, 8], strides = [1, 1, 1]} : vector<2x8x32xf32> to vector<2x8x8xf32>
    %170 = vector.extract_strided_slice %168 {offsets = [0, 0, 8], sizes = [2, 8, 8], strides = [1, 1, 1]} : vector<2x8x32xf32> to vector<2x8x8xf32>
    %171 = vector.extract_strided_slice %168 {offsets = [0, 0, 16], sizes = [2, 8, 8], strides = [1, 1, 1]} : vector<2x8x32xf32> to vector<2x8x8xf32>
    %172 = vector.extract_strided_slice %168 {offsets = [0, 0, 24], sizes = [2, 8, 8], strides = [1, 1, 1]} : vector<2x8x32xf32> to vector<2x8x8xf32>
    %173 = tpu.concatenate %169, %170, %171, %172 in 0 : vector<2x8x8xf32>, vector<2x8x8xf32>, vector<2x8x8xf32>, vector<2x8x8xf32> -> vector<8x8x8xf32>
    %174 = arith.truncf %173 : vector<8x8x8xf32> to vector<8x8x8xbf16>
    %175 = vector.shape_cast %157 : vector<32x32xf32> to vector<2x16x32xf32>
    %176 = vector.extract_strided_slice %175 {offsets = [0, 0, 0], sizes = [2, 16, 8], strides = [1, 1, 1]} : vector<2x16x32xf32> to vector<2x16x8xf32>
    %177 = vector.extract_strided_slice %175 {offsets = [0, 0, 8], sizes = [2, 16, 8], strides = [1, 1, 1]} : vector<2x16x32xf32> to vector<2x16x8xf32>
    %178 = vector.extract_strided_slice %175 {offsets = [0, 0, 16], sizes = [2, 16, 8], strides = [1, 1, 1]} : vector<2x16x32xf32> to vector<2x16x8xf32>
    %179 = vector.extract_strided_slice %175 {offsets = [0, 0, 24], sizes = [2, 16, 8], strides = [1, 1, 1]} : vector<2x16x32xf32> to vector<2x16x8xf32>
    %180 = tpu.concatenate %176, %177, %178, %179 in 0 : vector<2x16x8xf32>, vector<2x16x8xf32>, vector<2x16x8xf32>, vector<2x16x8xf32> -> vector<8x16x8xf32>
    %181 = arith.truncf %180 : vector<8x16x8xf32> to vector<8x16x8xbf16>
    %182 = vector.shape_cast %165 : vector<32x32xf32> to vector<2x16x32xf32>
    %183 = vector.extract_strided_slice %182 {offsets = [0, 0, 0], sizes = [2, 16, 8], strides = [1, 1, 1]} : vector<2x16x32xf32> to vector<2x16x8xf32>
    %184 = vector.extract_strided_slice %182 {offsets = [0, 0, 8], sizes = [2, 16, 8], strides = [1, 1, 1]} : vector<2x16x32xf32> to vector<2x16x8xf32>
    %185 = vector.extract_strided_slice %182 {offsets = [0, 0, 16], sizes = [2, 16, 8], strides = [1, 1, 1]} : vector<2x16x32xf32> to vector<2x16x8xf32>
    %186 = vector.extract_strided_slice %182 {offsets = [0, 0, 24], sizes = [2, 16, 8], strides = [1, 1, 1]} : vector<2x16x32xf32> to vector<2x16x8xf32>
    %187 = tpu.concatenate %183, %184, %185, %186 in 0 : vector<2x16x8xf32>, vector<2x16x8xf32>, vector<2x16x8xf32>, vector<2x16x8xf32> -> vector<8x16x8xf32>
    %188 = arith.truncf %187 : vector<8x16x8xf32> to vector<8x16x8xbf16>
    "tpu.trace_start"() <{level = 10 : i32, message = "brd,bsd->brs"}> : () -> ()
    %cst_54 = arith.constant dense<0.000000e+00> : vector<8x8x16xf32>
    %189 = tpu.matmul %174, %181, %cst_54 {dimension_numbers = #tpu.dot_dimension_numbers<[2], [2], [1], [1], [0, 0, 0, 1, 1, 1], [0], [0]>} : vector<8x8x8xbf16>, vector<8x16x8xbf16>, vector<8x8x16xf32> -> vector<8x8x16xf32>
    "tpu.trace_stop"() : () -> ()
    %cst_55 = arith.constant dense<0xFF800000> : vector<8x8xf32>
    %190 = vector.multi_reduction <maximumf>, %189, %cst_55 [2] : vector<8x8x16xf32> to vector<8x8xf32>
    %191 = vector.shape_cast %190 : vector<8x8xf32> to vector<8x8x1xf32>
    %192 = vector.broadcast %191 : vector<8x8x1xf32> to vector<8x8x16xf32>
    %193 = arith.subf %189, %192 : vector<8x8x16xf32>
    %194 = math.exp %193 : vector<8x8x16xf32>
    %cst_56 = arith.constant dense<0.000000e+00> : vector<8x8xf32>
    %195 = vector.multi_reduction <add>, %194, %cst_56 [2] : vector<8x8x16xf32> to vector<8x8xf32>
    %196 = vector.shape_cast %195 : vector<8x8xf32> to vector<8x8x1xf32>
    %197 = tpu.reciprocal %196 {approx = true} : vector<8x8x1xf32> -> vector<8x8x1xf32>
    %198 = vector.broadcast %197 : vector<8x8x1xf32> to vector<8x8x16xf32>
    %199 = arith.mulf %194, %198 : vector<8x8x16xf32>
    %200 = arith.truncf %199 : vector<8x8x16xf32> to vector<8x8x16xbf16>
    "tpu.trace_start"() <{level = 10 : i32, message = "brs,bsd->brd"}> : () -> ()
    %cst_57 = arith.constant dense<0.000000e+00> : vector<8x8x8xf32>
    %201 = tpu.matmul %200, %188, %cst_57 {dimension_numbers = #tpu.dot_dimension_numbers<[2], [1], [1], [2], [0, 0, 0, 1, 1, 2], [0], [0]>} : vector<8x8x16xbf16>, vector<8x16x8xbf16>, vector<8x8x8xf32> -> vector<8x8x8xf32>
    "tpu.trace_stop"() : () -> ()
    %202 = vector.extract_strided_slice %201 {offsets = [0, 0, 0], sizes = [2, 8, 8], strides = [1, 1, 1]} : vector<8x8x8xf32> to vector<2x8x8xf32>
    %203 = vector.extract_strided_slice %201 {offsets = [2, 0, 0], sizes = [2, 8, 8], strides = [1, 1, 1]} : vector<8x8x8xf32> to vector<2x8x8xf32>
    %204 = vector.extract_strided_slice %201 {offsets = [4, 0, 0], sizes = [2, 8, 8], strides = [1, 1, 1]} : vector<8x8x8xf32> to vector<2x8x8xf32>
    %205 = vector.extract_strided_slice %201 {offsets = [6, 0, 0], sizes = [2, 8, 8], strides = [1, 1, 1]} : vector<8x8x8xf32> to vector<2x8x8xf32>
    %206 = tpu.concatenate %202, %203, %204, %205 in 2 : vector<2x8x8xf32>, vector<2x8x8xf32>, vector<2x8x8xf32>, vector<2x8x8xf32> -> vector<2x8x32xf32>
    %207 = vector.shape_cast %206 : vector<2x8x32xf32> to vector<16x32xf32>
    %208 = arith.truncf %207 : vector<16x32xf32> to vector<16x32xbf16>
    %c0_58 = arith.constant 0 : index
    %c7 = arith.constant 7 : index
    %c0_59 = arith.constant 0 : index
    %c0_60 = arith.constant 0 : index
    %209 = vector.load %arg5[%c0_58, %c7, %c0_59, %c0_60] : memref<1x10x32x32xbf16, #tpu.memory_space<vmem>>, vector<1x1x32x32xbf16>
    %210 = vector.shape_cast %209 : vector<1x1x32x32xbf16> to vector<32x32xbf16>
    %cst_61 = arith.constant dense<0.000000e+00> : vector<16x32xf32>
    %211 = tpu.matmul %208, %210, %cst_61 {dimension_numbers = #tpu.dot_dimension_numbers<[1], [0], [0], [1], [0, 0, 1, 1], [], []>} : vector<16x32xbf16>, vector<32x32xbf16>, vector<16x32xf32> -> vector<16x32xf32>
    %212 = vector.extract_strided_slice %5 {offsets = [7, 0], sizes = [1, 32], strides = [1, 1]} : vector<18x32xf32> to vector<1x32xf32>
    %213 = vector.shape_cast %212 : vector<1x32xf32> to vector<32xf32>
    %214 = vector.shape_cast %213 : vector<32xf32> to vector<1x32xf32>
    %215 = vector.broadcast %214 : vector<1x32xf32> to vector<16x32xf32>
    %216 = arith.addf %211, %215 : vector<16x32xf32>
    %217 = arith.addf %112, %216 : vector<16x32xf32>
    %218 = vector.extract_strided_slice %5 {offsets = [12, 0], sizes = [1, 32], strides = [1, 1]} : vector<18x32xf32> to vector<1x32xf32>
    %219 = vector.shape_cast %218 : vector<1x32xf32> to vector<32xf32>
    %220 = vector.extract_strided_slice %5 {offsets = [16, 0], sizes = [1, 32], strides = [1, 1]} : vector<18x32xf32> to vector<1x32xf32>
    %221 = vector.shape_cast %220 : vector<1x32xf32> to vector<32xf32>
    %cst_62 = arith.constant dense<0.000000e+00> : vector<16xf32>
    %222 = vector.multi_reduction <add>, %217, %cst_62 [1] : vector<16x32xf32> to vector<16xf32>
    %223 = vector.shape_cast %222 : vector<16xf32> to vector<16x1xf32>
    %cst_63 = arith.constant 3.200000e+01 : f32
    %224 = vector.broadcast %cst_63 : f32 to vector<16x1xf32>
    %225 = arith.divf %223, %224 : vector<16x1xf32>
    %226 = vector.broadcast %225 : vector<16x1xf32> to vector<16x32xf32>
    %227 = arith.subf %217, %226 : vector<16x32xf32>
    %228 = arith.mulf %227, %227 : vector<16x32xf32>
    %cst_64 = arith.constant dense<0.000000e+00> : vector<16xf32>
    %229 = vector.multi_reduction <add>, %228, %cst_64 [1] : vector<16x32xf32> to vector<16xf32>
    %230 = vector.shape_cast %229 : vector<16xf32> to vector<16x1xf32>
    %cst_65 = arith.constant 3.200000e+01 : f32
    %231 = vector.broadcast %cst_65 : f32 to vector<16x1xf32>
    %232 = arith.divf %230, %231 : vector<16x1xf32>
    %cst_66 = arith.constant 9.99999974E-6 : f32
    %233 = vector.broadcast %cst_66 : f32 to vector<16x1xf32>
    %234 = arith.addf %232, %233 : vector<16x1xf32>
    %235 = math.rsqrt %234 : vector<16x1xf32>
    %236 = vector.broadcast %235 : vector<16x1xf32> to vector<16x32xf32>
    %237 = arith.mulf %227, %236 : vector<16x32xf32>
    %238 = vector.shape_cast %219 : vector<32xf32> to vector<1x32xf32>
    %239 = vector.broadcast %238 : vector<1x32xf32> to vector<16x32xf32>
    %240 = arith.mulf %237, %239 : vector<16x32xf32>
    %241 = vector.shape_cast %221 : vector<32xf32> to vector<1x32xf32>
    %242 = vector.broadcast %241 : vector<1x32xf32> to vector<16x32xf32>
    %243 = arith.addf %240, %242 : vector<16x32xf32>
    %244 = arith.truncf %243 : vector<16x32xf32> to vector<16x32xbf16>
    %c0_67 = arith.constant 0 : index
    %c8 = arith.constant 8 : index
    %c0_68 = arith.constant 0 : index
    %c0_69 = arith.constant 0 : index
    %245 = vector.load %arg5[%c0_67, %c8, %c0_68, %c0_69] : memref<1x10x32x32xbf16, #tpu.memory_space<vmem>>, vector<1x1x32x32xbf16>
    %246 = vector.shape_cast %245 : vector<1x1x32x32xbf16> to vector<32x32xbf16>
    %cst_70 = arith.constant dense<0.000000e+00> : vector<16x32xf32>
    %247 = tpu.matmul %244, %246, %cst_70 {dimension_numbers = #tpu.dot_dimension_numbers<[1], [0], [0], [1], [0, 0, 1, 1], [], []>} : vector<16x32xbf16>, vector<32x32xbf16>, vector<16x32xf32> -> vector<16x32xf32>
    %248 = vector.extract_strided_slice %5 {offsets = [8, 0], sizes = [1, 32], strides = [1, 1]} : vector<18x32xf32> to vector<1x32xf32>
    %249 = vector.shape_cast %248 : vector<1x32xf32> to vector<32xf32>
    %250 = vector.shape_cast %249 : vector<32xf32> to vector<1x32xf32>
    %251 = vector.broadcast %250 : vector<1x32xf32> to vector<16x32xf32>
    %252 = arith.addf %247, %251 : vector<16x32xf32>
    %cst_71 = arith.constant 0.000000e+00 : f32
    %253 = vector.broadcast %cst_71 : f32 to vector<16x32xf32>
    %254 = arith.maximumf %252, %253 : vector<16x32xf32>
    %255 = arith.truncf %254 : vector<16x32xf32> to vector<16x32xbf16>
    %c0_72 = arith.constant 0 : index
    %c9 = arith.constant 9 : index
    %c0_73 = arith.constant 0 : index
    %c0_74 = arith.constant 0 : index
    %256 = vector.load %arg5[%c0_72, %c9, %c0_73, %c0_74] : memref<1x10x32x32xbf16, #tpu.memory_space<vmem>>, vector<1x1x32x32xbf16>
    %257 = vector.shape_cast %256 : vector<1x1x32x32xbf16> to vector<32x32xbf16>
    %cst_75 = arith.constant dense<0.000000e+00> : vector<16x32xf32>
    %258 = tpu.matmul %255, %257, %cst_75 {dimension_numbers = #tpu.dot_dimension_numbers<[1], [0], [0], [1], [0, 0, 1, 1], [], []>} : vector<16x32xbf16>, vector<32x32xbf16>, vector<16x32xf32> -> vector<16x32xf32>
    %259 = vector.extract_strided_slice %5 {offsets = [9, 0], sizes = [1, 32], strides = [1, 1]} : vector<18x32xf32> to vector<1x32xf32>
    %260 = vector.shape_cast %259 : vector<1x32xf32> to vector<32xf32>
    %261 = vector.shape_cast %260 : vector<32xf32> to vector<1x32xf32>
    %262 = vector.broadcast %261 : vector<1x32xf32> to vector<16x32xf32>
    %263 = arith.addf %258, %262 : vector<16x32xf32>
    %264 = arith.addf %217, %263 : vector<16x32xf32>
    %265 = vector.extract_strided_slice %5 {offsets = [13, 0], sizes = [1, 32], strides = [1, 1]} : vector<18x32xf32> to vector<1x32xf32>
    %266 = vector.shape_cast %265 : vector<1x32xf32> to vector<32xf32>
    %267 = vector.extract_strided_slice %5 {offsets = [17, 0], sizes = [1, 32], strides = [1, 1]} : vector<18x32xf32> to vector<1x32xf32>
    %268 = vector.shape_cast %267 : vector<1x32xf32> to vector<32xf32>
    %cst_76 = arith.constant dense<0.000000e+00> : vector<16xf32>
    %269 = vector.multi_reduction <add>, %264, %cst_76 [1] : vector<16x32xf32> to vector<16xf32>
    %270 = vector.shape_cast %269 : vector<16xf32> to vector<16x1xf32>
    %cst_77 = arith.constant 3.200000e+01 : f32
    %271 = vector.broadcast %cst_77 : f32 to vector<16x1xf32>
    %272 = arith.divf %270, %271 : vector<16x1xf32>
    %273 = vector.broadcast %272 : vector<16x1xf32> to vector<16x32xf32>
    %274 = arith.subf %264, %273 : vector<16x32xf32>
    %275 = arith.mulf %274, %274 : vector<16x32xf32>
    %cst_78 = arith.constant dense<0.000000e+00> : vector<16xf32>
    %276 = vector.multi_reduction <add>, %275, %cst_78 [1] : vector<16x32xf32> to vector<16xf32>
    %277 = vector.shape_cast %276 : vector<16xf32> to vector<16x1xf32>
    %cst_79 = arith.constant 3.200000e+01 : f32
    %278 = vector.broadcast %cst_79 : f32 to vector<16x1xf32>
    %279 = arith.divf %277, %278 : vector<16x1xf32>
    %cst_80 = arith.constant 9.99999974E-6 : f32
    %280 = vector.broadcast %cst_80 : f32 to vector<16x1xf32>
    %281 = arith.addf %279, %280 : vector<16x1xf32>
    %282 = math.rsqrt %281 : vector<16x1xf32>
    %283 = vector.broadcast %282 : vector<16x1xf32> to vector<16x32xf32>
    %284 = arith.mulf %274, %283 : vector<16x32xf32>
    %285 = vector.shape_cast %266 : vector<32xf32> to vector<1x32xf32>
    %286 = vector.broadcast %285 : vector<1x32xf32> to vector<16x32xf32>
    %287 = arith.mulf %284, %286 : vector<16x32xf32>
    %288 = vector.shape_cast %268 : vector<32xf32> to vector<1x32xf32>
    %289 = vector.broadcast %288 : vector<1x32xf32> to vector<16x32xf32>
    %290 = arith.addf %287, %289 : vector<16x32xf32>
    %c0_81 = arith.constant 0 : index
    %c0_82 = arith.constant 0 : index
    %291 = vector.load %arg11[%c0_81, %c0_82] : memref<16x32xf32, #tpu.memory_space<vmem>>, vector<16x32xf32>
    tpu.vector_store %arg11[%c0_81, %c0_82], %290 {strides = array<i32>} : memref<16x32xf32, #tpu.memory_space<vmem>>, vector<16x32xf32>,
    %c1_i32 = arith.constant 1 : i32
    %292 = arith.cmpi eq, %arg0, %c1_i32 : i32
    %293 = arith.extui %292 : i1 to i32
    %c0_i32_83 = arith.constant 0 : i32
    %294 = arith.cmpi ne, %293, %c0_i32_83 : i32
    scf.if %294 {
      %295 = arith.truncf %290 : vector<16x32xf32> to vector<16x32xbf16>
      %c0_84 = arith.constant 0 : index
      %c0_85 = arith.constant 0 : index
      %296 = vector.load %arg7[%c0_84, %c0_85] : memref<32x128xbf16, #tpu.memory_space<vmem>>, vector<32x128xbf16>
      %cst_86 = arith.constant dense<0.000000e+00> : vector<16x128xf32>
      %297 = tpu.matmul %295, %296, %cst_86 {dimension_numbers = #tpu.dot_dimension_numbers<[1], [0], [0], [1], [0, 0, 1, 1], [], []>} : vector<16x32xbf16>, vector<32x128xbf16>, vector<16x128xf32> -> vector<16x128xf32>
      %c0_87 = arith.constant 0 : index
      %c0_88 = arith.constant 0 : index
      %298 = vector.load %arg8[%c0_87, %c0_88] : memref<1x128xf32, #tpu.memory_space<vmem>>, vector<1x128xf32>
      %299 = vector.shape_cast %298 : vector<1x128xf32> to vector<128xf32>
      %300 = vector.shape_cast %299 : vector<128xf32> to vector<1x128xf32>
      %301 = vector.broadcast %300 : vector<1x128xf32> to vector<16x128xf32>
      %302 = arith.addf %297, %301 : vector<16x128xf32>
      %c0_89 = arith.constant 0 : index
      %c0_90 = arith.constant 0 : index
      %303 = vector.load %arg9[%c0_89, %c0_90] : memref<16x128xf32, #tpu.memory_space<vmem>>, vector<16x128xf32>
      tpu.vector_store %arg9[%c0_89, %c0_90], %302 {strides = array<i32>} : memref<16x128xf32, #tpu.memory_space<vmem>>, vector<16x128xf32>,
      %304 = tpu.iota {dimensions = array<i32: 1>} : vector<16x128xi32>
      %cst_91 = arith.constant dense<0xFF800000> : vector<16xf32>
      %305 = vector.multi_reduction <maximumf>, %302, %cst_91 [1] : vector<16x128xf32> to vector<16xf32>
      %306 = vector.shape_cast %305 : vector<16xf32> to vector<16x1xf32>
      %307 = vector.broadcast %306 : vector<16x1xf32> to vector<16x128xf32>
      %308 = arith.cmpf oeq, %302, %307 : vector<16x128xf32>
      %c1073741824_i32 = arith.constant 1073741824 : i32
      %309 = vector.broadcast %c1073741824_i32 : i32 to vector<16x128xi32>
      %310 = arith.select %308, %304, %309 : vector<16x128xi1>, vector<16x128xi32>
      %cst_92 = arith.constant dense<2147483647> : vector<16xi32>
      %311 = vector.multi_reduction <minsi>, %310, %cst_92 [1] : vector<16x128xi32> to vector<16xi32>
      %312 = vector.shape_cast %311 : vector<16xi32> to vector<16x1xi32>
      %c0_93 = arith.constant 0 : index
      %c0_94 = arith.constant 0 : index
      %313 = vector.load %arg10[%c0_93, %c0_94] : memref<16x1xi32, #tpu.memory_space<vmem>>, vector<16x1xi32>
      tpu.vector_store %arg10[%c0_93, %c0_94], %312 {strides = array<i32>} : memref<16x1xi32, #tpu.memory_space<vmem>>, vector<16x1xi32>,
    } else {
    }
    return
  }
  func.func @transform_0(%arg0: i32) -> (i32, i32, i32) {
    %c0_i32 = arith.constant 0 : i32
    %c0_i32_0 = arith.constant 0 : i32
    %c0_i32_1 = arith.constant 0 : i32
    %c0_i32_2 = arith.constant 0 : i32
    return %c0_i32, %c0_i32_0, %c0_i32_1 : i32, i32, i32
  }
  func.func @transform_1(%arg0: i32) -> (i32, i32, i32) {
    %c0_i32 = arith.constant 0 : i32
    %c0_i32_0 = arith.constant 0 : i32
    %c0_i32_1 = arith.constant 0 : i32
    %c0_i32_2 = arith.constant 0 : i32
    return %c0_i32, %c0_i32_0, %c0_i32_1 : i32, i32, i32
  }
  func.func @transform_2(%arg0: i32) -> (i32, i32) {
    %c0_i32 = arith.constant 0 : i32
    %c0_i32_0 = arith.constant 0 : i32
    %c0_i32_1 = arith.constant 0 : i32
    return %c0_i32, %c0_i32_0 : i32, i32
  }
  func.func @transform_3(%arg0: i32) -> (i32, i32) {
    %c0_i32 = arith.constant 0 : i32
    %c0_i32_0 = arith.constant 0 : i32
    %c0_i32_1 = arith.constant 0 : i32
    return %c0_i32, %c0_i32_0 : i32, i32
  }
  func.func @transform_4(%arg0: i32) -> (i32, i32, i32, i32) {
    %c0_i32 = arith.constant 0 : i32
    %c0_i32_0 = arith.constant 0 : i32
    %c0_i32_1 = arith.constant 0 : i32
    %c0_i32_2 = arith.constant 0 : i32
    return %arg0, %c0_i32, %c0_i32_0, %c0_i32_1 : i32, i32, i32, i32
  }
  func.func @transform_5(%arg0: i32) -> (i32, i32, i32) {
    %c0_i32 = arith.constant 0 : i32
    %c0_i32_0 = arith.constant 0 : i32
    %c0_i32_1 = arith.constant 0 : i32
    return %arg0, %c0_i32, %c0_i32_0 : i32, i32, i32
  }
  func.func @transform_6(%arg0: i32) -> (i32, i32) {
    %c0_i32 = arith.constant 0 : i32
    %c0_i32_0 = arith.constant 0 : i32
    %c0_i32_1 = arith.constant 0 : i32
    return %c0_i32, %c0_i32_0 : i32, i32
  }
  func.func @transform_7(%arg0: i32) -> (i32, i32) {
    %c0_i32 = arith.constant 0 : i32
    %c0_i32_0 = arith.constant 0 : i32
    %c0_i32_1 = arith.constant 0 : i32
    return %c0_i32, %c0_i32_0 : i32, i32
  }
  func.func @transform_8(%arg0: i32) -> (i32, i32) {
    %c0_i32 = arith.constant 0 : i32
    %c0_i32_0 = arith.constant 0 : i32
    %c0_i32_1 = arith.constant 0 : i32
    return %c0_i32, %c0_i32_0 : i32, i32
  }
  func.func @transform_9(%arg0: i32) -> (i32, i32) {
    %c0_i32 = arith.constant 0 : i32
    %c0_i32_0 = arith.constant 0 : i32
    %c0_i32_1 = arith.constant 0 : i32
    return %c0_i32, %c0_i32_0 : i32, i32
  }
}

</mosaic_0001>

<bundles_post_ra>
// kernel: tpu_custom_call.1
= control target key start
LH: loop header
LB: loop body
LE: loop exit
PB: predicated region body
PF: predicated region fallthrough
CT: control target
= control target key end

     0   :  { %15 = vsyncpa [#allocation4], 0  ;;  %s5018_s0 = inlined_call_operand.vmem [shape: f32[2,8,32], index: 0, kind: input, shape index: {}]   ;;  %s5019_s1 = inlined_call_operand.vmem [shape: bf16[2,16,32], index: 1, kind: input, shape index: {}]   ;;  %s5020_s2 = inlined_call_operand.vmem [shape: f32[2,32], index: 2, kind: input, shape index: {}]   ;;  %s5021_s3 = inlined_call_operand.vmem [shape: f32[8,8], index: 3, kind: input, shape index: {}]   ;;  %s5022_s4 = inlined_call_operand.hbm [shape: bf16[2,10,32,32], index: 4, kind: input, shape index: {}]   ;;  %s5023_s5 = inlined_call_operand.vmem [shape: f32[2,18,32], index: 5, kind: input, shape index: {}]   ;;  %s5024_s6 = inlined_call_operand.vmem [shape: bf16[32,128], index: 6, kind: input, shape index: {}]   ;;  %s5025_s7 = inlined_call_operand.vmem [shape: f32[1,128], index: 7, kind: input, shape index: {}]   ;;  %s5026_s8 = inlined_call_operand.hbm [shape: f32[16,128], index: 8, kind: output, shape index: {0}]   ;;  %s5027_s9 = inlined_call_operand.vmem [shape: s32[16,1], index: 9, kind: output, shape index: {1}]  }
   0x1   :  { %17 = vsyncpa [#allocation4 + $0x1], 0 }
   0x2   :  { %18 = vsyncpa [#allocation5], 0  ;;  %s4352_s30 = smov 0   ;;  %s4354_s10 = smov 0  }
   0x3   :  { %s4356_s11 = smov 0   ;;  %s4358_s12 = smov 0  }
   0x4 LB: > { %s4371_s13 = sadd.s32 4294967295, %s4285_s12   ;;  %s4374_s14 = sadd.s32 1, %s4285_s12   ;;  %s4285_s12 = sphi %s4358_s12, %s5034_s12   ;;  %s4281_s11 = sphi %s4356_s11, %s5033_s11   ;;  %s4277_s10 = sphi %s4354_s10, %s5032_s10   ;;  %s4273_s30 = sphi %s4352_s30, %s5031_s30  }
   0x5   : > { %s112_s15 = ssub.s32 %s4285_s12, %s4374_s14  ;;  %s115_s16 = sadd.s32 1, %s4281_s11 }
   0x6   : > { %p113_p0 = scmp.eq.s32.totalorder %s112_s15, 0  ;;  %p122_p1 = scmp.ne.s32.totalorder %s4281_s11, %s4277_s10 }
   0x7   : > { %p123_p2 = scmp.eq.s32.totalorder %s4285_s12, 0  ;;  %p128_p3 = scmp.ne.s32.totalorder %s4277_s10, %s4273_s30 }
   0x8   : > { %s4384_s17 = scalar_select %p113_p0, %s4281_s11, %s115_s16  }
   0x9   : > { %p124_p4 = por %p123_p2, %p122_p1  ;;  %p129_p5 = scmp.eq.s32.totalorder %s4371_s13, 0 }
   0xa   : > { %p3880_p6 = scmp.lt.s32.totalorder %s4285_s12, 2  ;;  %s280_s19 = sand.u32 1, %s4281_s11  }
   0xb   : > { %p4388_p7 = por %p129_p5, %p128_p3  ;;  %s3866_s20 = smul.u32 160, %s280_s19 }
   0xc   : > { %s3867_s21 = smul.u32 2560, %s4285_s12  ;;  %p4394_p8 = pnand %p3880_p6, %p124_p4 }
   0xd   : > { %s284_s26 = scalar_lea.vmem [#allocation3], %s3866_s20  ;;  %s4406_s28 = scalar_lea.sflag [#allocation4], %s280_s19 }
   0xe   : > { %s4401_s25 = scalar_lea.hbm %s5022_s4, %s3867_s21  ;;  %s291_s27 = sshll.u32 %s284_s26, 4  ;;  %s4403_s27 = int_to_ptr.vmem [resolvable:$true] %s291_s27 }
   0xf   : > { %s4191_s29 = scalar_lea.hbm %s4401_s25, 2560  ;;  %p4193_p11 = pneg %p4394_p8 }
  0x10   : > { %p4192_p10 = scmp.ne.s32.totalorder %s4401_s25, %s4191_s29  ;;  %s4196_s16 = scalar_lea.hbm %s5022_s4, 5120 }
  0x11   : > { %p4197_p0 = scmp.lt.u32.totalorder %s4401_s25, %s5022_s4  ;;  %p4198_p1 = scmp.lt.u32.totalorder %s4196_s16, %s4191_s29 }
  0x12   : > { %p4194_p12 = pnand %p4193_p11, %p4192_p10  ;;  %p4200_p3 = scmp.lt.u32.totalorder %s4191_s29, %s4401_s25 }
  0x13   : > { %p4199_p2 = por %p4198_p1, %p4197_p0 }
  0x14   : > { %p4195_p13 = pneg %p4194_p12 }
  0x15   : > { %p4201_p4 = por %p4200_p3, %p4199_p2 }
  0x17   : > { %p4202_p5 = pnand %p4201_p4, %p4195_p13 }
  0x19   : > { %4205 = shalt.err (!%p4202_p5)
}
  0x1a   : > { %s4206_s19 = scalar_lea.vmem %s4403_s27, 2560  ;;  %s4287_s23 = smov [#allocation3]  }
  0x1b   : > { %p4207_p6 = scmp.ne.s32.totalorder %s4403_s27, %s4206_s19  ;;  %s4211_s24 = sshll.u32 %s4287_s23, 4  ;;  %s4212_s24 = int_to_ptr.vmem [resolvable:$false] %s4211_s24 }
  0x1c   : > { %s4213_s26 = scalar_lea.vmem %s4212_s24, 5120  ;;  %p4214_p9 = scmp.lt.s32.totalorder %s4403_s27, %s4212_s24 }
  0x1d   : > { %p4209_p10 = pnand %p4207_p6, %p4193_p11  ;;  %p4215_p0 = scmp.lt.s32.totalorder %s4213_s26, %s4206_s19 }
  0x1f   : > { %p4210_p12 = pneg %p4209_p10  ;;  %p4216_p1 = por %p4215_p0, %p4214_p9 }
  0x21   : > { %p4217_p2 = pnand %p4216_p1, %p4210_p12 }
  0x23   : > { %4220 = shalt.err (!%p4217_p2)
}
  0x24   : > { %s4288_s29 = smov 64   ;;  %s4289_s30 = smov 4  }
  0x25   : > { %3879 = dma.hbm_to_vmem [thread:$0]  (!%p4394_p8), %s4401_s25, 2560, %s4403_s27, %s4406_s28, %s4288_s29, %s4288_s29, %s4289_s30  }
  0x26   : > { %p307_p11 = scmp.lt.s32.totalorder %s4285_s12, 3  ;;  %p5030_p13 = scmp.ge.s32.totalorder %s4285_s12, 1 }
  0x28   : > { %p308_p3 = pnand %p5030_p13, %p307_p11 }
  0x29   : > { %s313_s15 = sand.u32 (!%p308_p3), 1, %s4277_s10  }
  0x2a   : > { %311 = sbr.rel (%p308_p3) target bundleno = 5739 (0x166b), region = 52  ;;  %s314_s21 = scalar_lea.sflag (!%p308_p3), [#allocation4], %s313_s15 }
  0x2b   : > { %s3868_s16 = smul.u32 (!%p308_p3), 160, %s313_s15 }
  0x2d   : > { %s4438_s20 = scalar_lea.vmem (!%p308_p3), [#allocation3], %s3868_s16 }
  0x31   : > { %4264 = dma.done.wait (%p4388_p7), %s314_s21, 2560  }
  0x32   : > { %4266 = vsyncadd (%p4388_p7), %s314_s21, 4294964736  ;;  %p352_p9 = scmp.lt.s32.totalorder %s4371_s13, 1  ;;  %p3373_p8 = scmp.ne.s32.totalorder %s4371_s13, 0 }
  0x33   : > { %v362_v0 = vld [vmem:[%s5018_s0] sm:$0xff] (!%p3373_p8)  ;;  %vm368_vm0 = vcmask (!%p3373_p8), 261120   ;;  %v363_v1 = vld [vmem:[%s5018_s0 + $0x8] sm:$0xff] (!%p3373_p8) }
  0x34   : > { %s353_s22 = scalar_select %p352_p9, %s4371_s13, 1 }
  0x35   : > { %361 = sbr.rel (%p3373_p8) target bundleno = 373 (0x175), region = 60  ;;  %v364_v2 = vmul.f32 (!%p3373_p8), 5.656854, %v362_v0  ;;  %v365_v3 = vmul.f32 (!%p3373_p8), 5.656854, %v363_v1 }
  0x36   : > { %s3869_s25 = smul.u32 24, %s353_s22  ;;  %v3374_v23 = vld [vmem:[%s5020_s2] ss:$0 sm:$0xff] (!%p3373_p8)  ;;  %v3375_v25 = vld [vmem:[%s5020_s2 + $0x1] ss:$0 sm:$0xff] (!%p3373_p8) }
  0x37   : > { %v369_v4 = vsel (!%p3373_p8), %vm368_vm0, %v364_v2, 0.0  ;;  %v372_v5 = vsel (!%p3373_p8), %vm368_vm0, %v365_v3, 0.0 }
  0x38   : > { %s4449_s28 = scalar_lea.vmem %s5023_s5, %s3869_s25  ;;  %370 = vadd.xlane.f32.xlu0 (!%p3373_p8), %v369_v4 }
  0x3c   : > { %373 = vadd.xlane.f32.xlu0 %v372_v5 }
  0xc5   : > { %v371_v6 = vpop.xlane.xlu0 %370 }
  0xc6   : > { %v376_v7 = vmul.f32 0.03125, %v371_v6 }
  0xc8   : > { %v378_v8 = vsub.f32 %v364_v2, %v376_v7 }
  0xc9   : > { %v374_v9 = vpop.xlane.xlu0 %373 }
  0xca   : > { %v377_v10 = vmul.f32 0.03125, %v374_v9  ;;  %v380_v11 = vmul.f32 %v378_v8, %v378_v8 }
  0xcc   : > { %v379_v12 = vsub.f32 %v365_v3, %v377_v10  ;;  %v382_v13 = vsel %vm368_vm0, %v380_v11, 0.0 }
  0xcd   : > { %383 = vadd.xlane.f32.xlu1 %v382_v13 }
  0xce   : > { %v381_v14 = vmul.f32 %v379_v12, %v379_v12 }
  0xd0   : > { %v385_v15 = vsel %vm368_vm0, %v381_v14, 0.0 }
  0xd1   : > { %386 = vadd.xlane.f32.xlu1 %v385_v15 }
 0x15a   : > { %v384_v16 = vpop.xlane.xlu1 %383 }
 0x15b   : > { %v388_v17 = vmul.f32 0.03125, %v384_v16 }
 0x15d   : > { %v390_v18 = vadd.f32 1e-05, %v388_v17 }
 0x15e   : > { %v387_v19 = vpop.xlane.xlu1 %386 }
 0x15f   : > { %3929 = vrsqrt.f32 %v390_v18  ;;  %v389_v20 = vmul.f32 0.03125, %v387_v19 }
 0x161   : > { %v391_v21 = vadd.f32 1e-05, %v389_v20 }
 0x163   : > { %3931 = vrsqrt.f32 %v391_v21 }
 0x169   : > { %v3930_v22 = vpop.eup %3929 }
 0x16a   : > { %v394_v24 = vmul.f32 %v3930_v22, %v378_v8 }
 0x16c   : > { %v400_v26 = vmul.f32 %v3374_v23, %v394_v24 }
 0x16d   : > { %v3932_v27 = vpop.eup %3931 }
 0x16e   : > { %v406_v28 = vadd.f32 %v3375_v25, %v400_v26  ;;  %v395_v29 = vmul.f32 %v3932_v27, %v379_v12 }
 0x170   : > { %408 = vst.msk [vmem:[#allocation2] sm:$0xff] %vm368_vm0, %v406_v28  ;;  %v401_v30 = vmul.f32 %v3374_v23, %v395_v29 }
 0x172   : > { %v407_v31 = vadd.f32 %v3375_v25, %v401_v30 }
 0x174   : > { %409 = vst.msk [vmem:[#allocation2 + $0x8] sm:$0xff] %vm368_vm0, %v407_v31 }
 0x175 PF: > { %vm416_vm1 = vcmask 261120   ;;  %v4083_v46 = vld [vmem:[%s4438_s20] sm:$0xff]   ;;  %v4084_v47 = vld [vmem:[%s4438_s20 + $0x10] sm:$0xff]   ;;  %v4290_v48 = vmov 0.0   ;;  %v4085_v49 = vld [vmem:[%s4438_s20 + $0x8] sm:$0xff]   ;;  %vm4291_vm2 = vmmov 0   ;;  %v444_v55 = vlaneseq }
 0x176   : > { %3586 = vmatprep.subr.bf16.mxu0 %v4290_v48  ;;  %3594 = vmatprep.subr.bf16.mxu1 %v4290_v48  ;;  %v4086_v50 = vld [vmem:[%s4438_s20 + $0x18] sm:$0xff]   ;;  %v4087_v8 = vld [vmem:[%s4438_s20 + $0x20] sm:$0xff]   ;;  %v4088_v10 = vld [vmem:[%s4438_s20 + $0x28] sm:$0xff]   ;;  %vm731_vm3 = vcmask 64512   ;;  %s4292_s16 = smov 120   ;;  %s4293_s21 = smov 104  }
 0x177   : > { %v410_v32 = vld [vmem:[#allocation2] sm:$0xff]  ;;  %3587 = vmatpush3.bf16.msra.mxu0 %v4083_v46  ;;  %3595 = vmatpush3.bf16.msra.mxu1 %v4084_v47  ;;  %v4489_v58 = vshrl.u32 %v444_v55, 7  ;;  %v4493_v60 = vld [vmem:[%s4449_s28 + $0x8] sm:$0xff]  ;;  %s4294_s22 = smov 112   ;;  %vm1199_vm4 = vcmask 1043456   ;;  %s4295_s27 = smov 8  }
 0x178   : > { %v417_v34 = vsel %vm416_vm1, %v410_v32, 0.0  ;;  %3588 = vmatprep.subr.bf16.mxu0 %v4290_v48  ;;  %3596 = vmatprep.subr.bf16.mxu1 %v4290_v48  ;;  %v4520_v13 = vld [vmem:[%s4449_s28] sm:$0xff]  ;;  %s4296_s19 = smov 16   ;;  %s4297_s23 = smov 24   ;;  %vm1591_vm5 = vcmask 130048   ;;  %vm1594_vm6 = vcmask 195584  }
 0x179   : > { %418 = vadd.xlane.f32.xlu0 %v417_v34  ;;  %3590 = vmatprep.mubr.msk.bf16.mxu0 %vm4291_vm2, %v4290_v48  ;;  %v446_v59 = vsub.s32 2, %v4489_v58  ;;  %v452_v0 = vsub.s32 6, %v4489_v58  ;;  %v4514_v11 = vsub.s32 0, %v4489_v58  ;;  %v4517_v12 = vsub.s32 1, %v4489_v58  ;;  %p3478_p7 = scmp.ne.s32.totalorder %s4371_s13, 1 }
 0x17a   : > { %3598 = vmatprep.mubr.msk.bf16.mxu1 %vm4291_vm2, %v4290_v48  ;;  %vm4299_vm7 = vmmov (!%p3478_p7), 0   ;;  %vm3287_vm12 = vcmask (!%p3478_p7), 7168  }
 0x17b   : > { %v411_v33 = vld [vmem:[#allocation2 + $0x8] sm:$0xff]  ;;  %3589 = vmatpush3.bf16.msra.mxu0 %v4085_v49  ;;  %3597 = vmatpush3.bf16.msra.mxu1 %v4086_v50  ;;  %v447_v63 = vrot.slane %v4493_v60, %v446_v59  ;;  %v453_v4 = vrot.slane %v4493_v60, %v452_v0  ;;  %v464_v14 = vrot.slane %v4520_v13, %v4514_v11 }
 0x17c   : > { %v420_v35 = vsel %vm416_vm1, %v411_v33, 0.0  ;;  %3602 = vmatprep.subr.bf16.mxu0 %v4290_v48  ;;  %3610 = vmatprep.subr.bf16.mxu1 %v4290_v48  ;;  %v529_v15 = vrot.slane %v4520_v13, %v4517_v12  ;;  %v591_v34 = vrot.slane %v4520_v13, %v446_v59 }
 0x17d   : > { %421 = vadd.xlane.f32.xlu0 %v420_v35 }
 0x206   : > { %v419_v36 = vpop.xlane.xlu0 %418 }
 0x207   : > { %v424_v37 = vmul.f32 0.03125, %v419_v36 }
 0x209   : > { %v426_v38 = vsub.f32 %v410_v32, %v424_v37 }
 0x20a   : > { %v422_v39 = vpop.xlane.xlu0 %421 }
 0x20b   : > { %v425_v40 = vmul.f32 0.03125, %v422_v39  ;;  %v428_v41 = vmul.f32 %v426_v38, %v426_v38 }
 0x20d   : > { %v427_v42 = vsub.f32 %v411_v33, %v425_v40  ;;  %v430_v43 = vsel %vm416_vm1, %v428_v41, 0.0 }
 0x20e   : > { %431 = vadd.xlane.f32.xlu1 %v430_v43 }
 0x20f   : > { %v429_v44 = vmul.f32 %v427_v42, %v427_v42 }
 0x211   : > { %v433_v45 = vsel %vm416_vm1, %v429_v44, 0.0 }
 0x212   : > { %434 = vadd.xlane.f32.xlu1 %v433_v45 }
 0x29b   : > { %v432_v51 = vpop.xlane.xlu1 %431 }
 0x29c   : > { %v436_v52 = vmul.f32 0.03125, %v432_v51 }
 0x29e   : > { %v438_v53 = vadd.f32 1e-05, %v436_v52 }
 0x29f   : > { %v435_v54 = vpop.xlane.xlu1 %434 }
 0x2a0   : > { %4105 = vrsqrt.f32 %v438_v53  ;;  %v437_v56 = vmul.f32 0.03125, %v435_v54 }
 0x2a2   : > { %v439_v57 = vadd.f32 1e-05, %v437_v56 }
 0x2a4   : > { %4107 = vrsqrt.f32 %v439_v57 }
 0x2aa   : > { %v4106_v61 = vpop.eup %4105 }
 0x2ab   : > { %v442_v62 = vmul.f32 %v4106_v61, %v426_v38 }
 0x2ad   : > { %v448_v3 = vmul.f32 %v447_v63, %v442_v62 }
 0x2ae   : > { %v4108_v1 = vpop.eup %4107 }
 0x2af   : > { %v443_v2 = vmul.f32 %v4108_v1, %v427_v42  ;;  %v454_v6 = vadd.f32 %v453_v4, %v448_v3 }
 0x2b1   : > { %v449_v5 = vmul.f32 %v447_v63, %v443_v2 }
 0x2b3   : > { %v455_v7 = vadd.f32 %v453_v4, %v449_v5 }
 0x2b5   : > { %v456_v9 = vpack.c.bf16 %v455_v7, %v454_v6 }
 0x2b7   : > { %3591 = vmatmul.mubr.msk.bf16.vlgmr.msra.gmra.mrb[0].mxu0 %vm416_vm1, %v456_v9  ;;  %3599 = vmatmul.mubr.msk.bf16.vlgmr.msra.gmra.mrb[0].mxu1 %vm416_vm1, %v456_v9 }
 0x2b8   : > { %3603 = vmatpush3.bf16.msra.mxu0 %v4087_v8  ;;  %3606 = vmatprep.mubr.msk.bf16.mxu0 %vm4291_vm2, %v4290_v48 }
 0x2b9   : > { %3604 = vmatprep.subr.bf16.mxu0 %v4290_v48  ;;  %3612 = vmatprep.mubr.msk.bf16.mxu1 %vm4291_vm2, %v4290_v48 }
 0x2bc   : > { %3605 = vmatpush3.bf16.msra.mxu0 %v4088_v10 }
 0x2bd   : > { %3616 = vmatprep.subr.bf16.mxu0 %v4290_v48 }
 0x2bf   : > { %3607 = vmatmul.mubr.msk.bf16.vlgmr.msra.gmra.mrb[4].mxu0 %vm416_vm1, %v456_v9 }
 0x2c0   : > { %3618 = vmatprep.mubr.msk.bf16.mxu0 %vm4291_vm2, %v4290_v48 }
 0x38a   : > { %v514_v16 = vpop.f32.mrb[0].mxu0  ;;  %v576_v17 = vpop.f32.mrb[0].mxu1 }
 0x38b   : > { %v515_v18 = vadd.f32 %v514_v16, %v464_v14  ;;  %v577_v19 = vadd.f32 %v576_v17, %v529_v15  ;;  %v3592_v20 = vpop.f32.mrb[1].mxu0  ;;  %v3600_v21 = vpop.f32.mrb[1].mxu1 }
 0x38c   : > { %v517_v22 = vpop.f32.mrb[2].mxu0  ;;  %v579_v23 = vpop.f32.mrb[2].mxu1 }
 0x38d   : > { %v518_v24 = vadd.f32 %v517_v22, %v464_v14  ;;  %v580_v25 = vadd.f32 %v579_v23, %v529_v15  ;;  %v3593_v26 = vpop.f32.mrb[3].mxu0  ;;  %v3601_v27 = vpop.f32.mrb[3].mxu1  ;;  %v695_v28 = vpack.c.bf16 %v577_v19, %v577_v19  ;;  %v645_v29 = vmul.f32 0.35355338, %v515_v18 }
 0x38f   : > { %v646_v30 = vmul.f32 0.35355338, %v518_v24  ;;  %v736_v31 = vsel %vm731_vm3, %v695_v28, 0  ;;  %v3933_v32 = vpack.i.bf16 %v580_v25, %v577_v19  ;;  %v696_v33 = vpack.c.bf16 %v580_v25, %v580_v25 }
 0x390   : > { %3611 = vmatpush3.bf16.xpose.msra.mxu1 %v736_v31  ;;  %v667_v40 = vpack.c.bf16 %v645_v29, %v645_v29 }
 0x391   : > { %3934 = vrot.lane.b32.xlu0 %v3933_v32, %s4292_s16  ;;  %v3938_v35 = vpack.i.bf16 %v646_v30, %v645_v29  ;;  %v782_v37 = vsel %vm731_vm3, %v696_v33, 0  ;;  %3622 = vmatprep.subr.bf16.mxu1 %v4290_v48  ;;  %v668_v45 = vpack.c.bf16 %v646_v30, %v646_v30  ;;  %v415_v30 = vld [vmem:[%s5021_s3] sm:$0xff] }
 0x392   : > { %v638_v36 = vpop.f32.mrb[4].mxu0  ;;  %3617 = vmatpush3.bf16.xpose.msra.mxu0 %v782_v37 }
 0x393   : > { %3939 = vrot.lane.b32.xlu1 %v3938_v35, %s4292_s16  ;;  %v3608_v38 = vpop.f32.mrb[5].mxu0  ;;  %3628 = vmatprep.subr.bf16.mxu0 %v4290_v48  ;;  %v4533_v41 = vadd.f32 %v638_v36, %v591_v34 }
 0x394   : > { %v641_v39 = vpop.f32.mrb[6].mxu0 }
 0x395   : > { %v4535_v42 = vadd.f32 %v641_v39, %v591_v34  ;;  %3954 = vrot.lane.b32.xlu0 %v3933_v32, %s4293_s21  ;;  %v3609_v43 = vpop.f32.mrb[7].mxu0  ;;  %v723_v24 = vpack.c.bf16 %v4533_v41, %v4533_v41 }
 0x397   : > { %3613 = vmatmul.mubr.msk.bf16.vlgmr.msra.gmra.mrb[4].mxu1 %vm731_vm3, %v667_v40  ;;  %3944 = vrot.lane.b32.xlu1 %v3933_v32, %s4294_s22  ;;  %v4542_v44 = vpack.i.bf16 %v4535_v42, %v4533_v41  ;;  %v724_v25 = vpack.c.bf16 %v4535_v42, %v4535_v42  ;;  %v1201_v28 = vsel %vm1199_vm4, %v723_v24, 0 }
 0x398   : > { %3624 = vmatprep.mubr.msk.bf16.mxu1 %vm4291_vm2, %v4290_v48 }
 0x399   : > { %3619 = vmatmul.mubr.msk.bf16.vlgmr.msra.gmra.mrb[8].mxu0 %vm731_vm3, %v668_v45  ;;  %v1247_v29 = vsel %vm1199_vm4, %v724_v25, 0 }
 0x39a   : > { %3630 = vmatprep.mubr.msk.bf16.mxu0 %vm4291_vm2, %v4290_v48 }
 0x39b   : > { %3949 = vrot.lane.b32.xlu1 %v3938_v35, %s4294_s22 }
 0x39f   : > { %3959 = vrot.lane.b32.xlu1 %v3938_v35, %s4293_s21 }
 0x403   : > { %v3935_v46 = vpop.permute.xlu0 %3934 }
 0x404   : > { %v3937_v47 = vunpack.i.h.bf16 %v3935_v46  ;;  %v3936_v49 = vunpack.i.l.bf16 %v3935_v46 }
 0x405   : > { %v3940_v50 = vpop.permute.xlu1 %3939 }
 0x406   : > { %v698_v51 = vpack.c.bf16 %v3937_v47, %v3937_v47  ;;  %v697_v52 = vpack.c.bf16 %v3936_v49, %v3936_v49  ;;  %v3942_v61 = vunpack.i.h.bf16 %v3940_v50  ;;  %v3941_v62 = vunpack.i.l.bf16 %v3940_v50 }
 0x407   : > { %v3955_v2 = vpop.permute.xlu0 %3954 }
 0x408   : > { %v828_v53 = vsel %vm731_vm3, %v697_v52, 0  ;;  %v874_v56 = vsel %vm731_vm3, %v698_v51, 0  ;;  %v670_v3 = vpack.c.bf16 %v3942_v61, %v3942_v61  ;;  %v669_v4 = vpack.c.bf16 %v3941_v62, %v3941_v62 }
 0x409   : > { %v3945_v54 = vpop.permute.xlu1 %3944  ;;  %3623 = vmatpush3.bf16.xpose.msra.mxu1 %v828_v53  ;;  %3629 = vmatpush3.bf16.xpose.msra.mxu0 %v874_v56  ;;  %v3957_v6 = vunpack.i.h.bf16 %v3955_v2  ;;  %v3956_v7 = vunpack.i.l.bf16 %v3955_v2 }
 0x40a   : > { %v3947_v57 = vunpack.i.h.bf16 %v3945_v54  ;;  %v3946_v59 = vunpack.i.l.bf16 %v3945_v54  ;;  %3634 = vmatprep.subr.bf16.mxu1 %v4290_v48  ;;  %3640 = vmatprep.subr.bf16.mxu0 %v4290_v48 }
 0x40b   : > { %v702_v15 = vpack.c.bf16 %v3957_v6, %v3957_v6  ;;  %v701_v16 = vpack.c.bf16 %v3956_v7, %v3956_v7 }
 0x40c   : > { %v700_v63 = vpack.c.bf16 %v3947_v57, %v3947_v57  ;;  %v699_v1 = vpack.c.bf16 %v3946_v59, %v3946_v59 }
 0x40d   : > { %v3950_v5 = vpop.permute.xlu1 %3949  ;;  %v1012_v20 = vsel %vm731_vm3, %v701_v16, 0  ;;  %v1058_v21 = vsel %vm731_vm3, %v702_v15, 0 }
 0x40e   : > { %v920_v8 = vsel %vm731_vm3, %v699_v1, 0  ;;  %v966_v9 = vsel %vm731_vm3, %v700_v63, 0  ;;  %v3952_v10 = vunpack.i.h.bf16 %v3950_v5  ;;  %v3951_v14 = vunpack.i.l.bf16 %v3950_v5 }
 0x410   : > { %3625 = vmatmul.mubr.msk.bf16.vlgmr.msra.gmra.mrb[8].mxu1 %vm731_vm3, %v669_v4  ;;  %3631 = vmatmul.mubr.msk.bf16.vlgmr.msra.gmra.mrb[12].mxu0 %vm731_vm3, %v670_v3  ;;  %v672_v17 = vpack.c.bf16 %v3952_v10, %v3952_v10  ;;  %v671_v18 = vpack.c.bf16 %v3951_v14, %v3951_v14 }
 0x411   : > { %3635 = vmatpush3.bf16.xpose.msra.mxu1 %v920_v8  ;;  %3641 = vmatpush3.bf16.xpose.msra.mxu0 %v966_v9  ;;  %v3960_v19 = vpop.permute.xlu1 %3959 }
 0x412   : > { %3636 = vmatprep.mubr.msk.bf16.mxu1 %vm4291_vm2, %v4290_v48  ;;  %3642 = vmatprep.mubr.msk.bf16.mxu0 %vm4291_vm2, %v4290_v48  ;;  %v3962_v22 = vunpack.i.h.bf16 %v3960_v19  ;;  %v3961_v23 = vunpack.i.l.bf16 %v3960_v19 }
 0x413   : > { %3646 = vmatprep.subr.bf16.mxu1 %v4290_v48  ;;  %3652 = vmatprep.subr.bf16.mxu0 %v4290_v48 }
 0x414   : > { %v674_v26 = vpack.c.bf16 %v3962_v22, %v3962_v22  ;;  %v673_v27 = vpack.c.bf16 %v3961_v23, %v3961_v23 }
 0x418   : > { %3637 = vmatmul.mubr.msk.bf16.vlgmr.msra.gmra.mrb[12].mxu1 %vm731_vm3, %v671_v18  ;;  %3643 = vmatmul.mubr.msk.bf16.vlgmr.msra.gmra.mrb[16].mxu0 %vm731_vm3, %v672_v17 }
 0x419   : > { %3647 = vmatpush3.bf16.xpose.msra.mxu1 %v1012_v20  ;;  %3653 = vmatpush3.bf16.xpose.msra.mxu0 %v1058_v21 }
 0x41a   : > { %3648 = vmatprep.mubr.msk.bf16.mxu1 %vm4291_vm2, %v4290_v48  ;;  %3654 = vmatprep.mubr.msk.bf16.mxu0 %vm4291_vm2, %v4290_v48 }
 0x41b   : > { %3658 = vmatprep.subr.bf16.mxu1 %v4290_v48  ;;  %3664 = vmatprep.subr.bf16.mxu0 %v4290_v48 }
 0x420   : > { %3649 = vmatmul.mubr.msk.bf16.vlgmr.msra.gmra.mrb[16].mxu1 %vm731_vm3, %v673_v27  ;;  %3655 = vmatmul.mubr.msk.bf16.vlgmr.msra.gmra.mrb[20].mxu0 %vm731_vm3, %v674_v26 }
 0x421   : > { %3659 = vmatpush3.bf16.msra.mxu1 %v1201_v28  ;;  %3665 = vmatpush3.bf16.msra.mxu0 %v1247_v29 }
 0x422   : > { %3660 = vmatprep.mubr.msk.bf16.mxu1 %vm4291_vm2, %v4290_v48  ;;  %3666 = vmatprep.mubr.msk.bf16.mxu0 %vm4291_vm2, %v4290_v48 }
 0x423   : > { %3670 = vmatprep.subr.bf16.mxu1 %v4290_v48  ;;  %3676 = vmatprep.subr.bf16.mxu0 %v4290_v48 }
 0x46a   : > { %v772_v31 = vpop.f32.mrb[4].mxu1 }
 0x46b   : > { %v773_v32 = vadd.f32 %v772_v31, %v415_v30  ;;  %v3614_v33 = vpop.f32.mrb[5].mxu1 }
 0x46c   : > { %v775_v34 = vpop.f32.mrb[6].mxu1  ;;  %v818_v35 = vpop.f32.mrb[8].mxu0 }
 0x46d   : > { %v3615_v36 = vpop.f32.mrb[7].mxu1  ;;  %v1100_v37 = vsel %vm731_vm3, %v773_v32, -inf  ;;  %v819_v38 = vadd.f32 %v818_v35, %v415_v30  ;;  %v3620_v39 = vpop.f32.mrb[9].mxu0 }
 0x46e   : > { %1101 = vmax.xlane.f32.xlu0 %v1100_v37  ;;  %v821_v40 = vpop.f32.mrb[10].mxu0 }
 0x46f   : > { %v3621_v41 = vpop.f32.mrb[11].mxu0  ;;  %v1103_v42 = vsel %vm731_vm3, %v819_v38, -inf }
 0x470   : > { %1104 = vmax.xlane.f32.xlu1 %v1103_v42 }
 0x4e3   : > { %v864_v43 = vpop.f32.mrb[8].mxu1  ;;  %v910_v45 = vpop.f32.mrb[12].mxu0 }
 0x4e4   : > { %v865_v46 = vadd.f32 %v864_v43, %v415_v30  ;;  %v3626_v47 = vpop.f32.mrb[9].mxu1  ;;  %v3632_v49 = vpop.f32.mrb[13].mxu0  ;;  %v911_v52 = vadd.f32 %v910_v45, %v415_v30 }
 0x4e5   : > { %v867_v50 = vpop.f32.mrb[10].mxu1  ;;  %v913_v51 = vpop.f32.mrb[14].mxu0 }
 0x4e6   : > { %v3627_v53 = vpop.f32.mrb[11].mxu1  ;;  %v3633_v54 = vpop.f32.mrb[15].mxu0  ;;  %v1106_v56 = vsel %vm731_vm3, %v865_v46, -inf  ;;  %v1109_v57 = vsel %vm731_vm3, %v911_v52, -inf }
 0x4e7   : > { %1107 = vmax.xlane.f32.xlu0 %v1106_v56 }
 0x4eb   : > { %v956_v59 = vpop.f32.mrb[12].mxu1  ;;  %1110 = vmax.xlane.f32.xlu0 %v1109_v57  ;;  %v1002_v61 = vpop.f32.mrb[16].mxu0 }
 0x4ec   : > { %v957_v62 = vadd.f32 %v956_v59, %v415_v30  ;;  %v1003_v63 = vadd.f32 %v1002_v61, %v415_v30  ;;  %v3638_v1 = vpop.f32.mrb[13].mxu1  ;;  %v3644_v2 = vpop.f32.mrb[17].mxu0 }
 0x4ed   : > { %v959_v3 = vpop.f32.mrb[14].mxu1  ;;  %v1005_v4 = vpop.f32.mrb[18].mxu0 }
 0x4ee   : > { %v3639_v5 = vpop.f32.mrb[15].mxu1  ;;  %v3645_v6 = vpop.f32.mrb[19].mxu0  ;;  %v1112_v7 = vsel %vm731_vm3, %v957_v62, -inf  ;;  %v1115_v8 = vsel %vm731_vm3, %v1003_v63, -inf }
 0x4ef   : > { %1113 = vmax.xlane.f32.xlu0 %v1112_v7  ;;  %1116 = vmax.xlane.f32.xlu1 %v1115_v8 }
 0x4f3   : > { %v1048_v9 = vpop.f32.mrb[16].mxu1  ;;  %v1094_v10 = vpop.f32.mrb[20].mxu0 }
 0x4f4   : > { %v1049_v14 = vadd.f32 %v1048_v9, %v415_v30  ;;  %v4598_v15 = vadd.f32 %v1094_v10, %v415_v30  ;;  %v3650_v16 = vpop.f32.mrb[17].mxu1  ;;  %v3656_v17 = vpop.f32.mrb[21].mxu0 }
 0x4f5   : > { %v1051_v18 = vpop.f32.mrb[18].mxu1  ;;  %v1097_v19 = vpop.f32.mrb[22].mxu0 }
 0x4f6   : > { %v3651_v20 = vpop.f32.mrb[19].mxu1  ;;  %v3657_v21 = vpop.f32.mrb[23].mxu0  ;;  %v1118_v22 = vsel %vm731_vm3, %v1049_v14, -inf  ;;  %v1121_v23 = vsel %vm731_vm3, %v4598_v15, -inf }
 0x4f7   : > { %1119 = vmax.xlane.f32.xlu0 %v1118_v22  ;;  %1122 = vmax.xlane.f32.xlu1 %v1121_v23 }
 0x4fb   : > { %v1102_v24 = vpop.xlane.xlu0 %1101 }
 0x4fc   : > { %v1124_v25 = vsub.f32 %v773_v32, %v1102_v24 }
 0x4fd   : > { %v1105_v27 = vpop.xlane.xlu1 %1104 }
 0x4fe   : > { %v1132_v26 = vmul.f32 1.442695, %v1124_v25  ;;  %v1125_v28 = vsub.f32 %v819_v38, %v1105_v27 }
 0x500   : > { %4109 = vpow2.f32 %v1132_v26  ;;  %v1134_v29 = vmul.f32 1.442695, %v1125_v28 }
 0x502   : > { %4111 = vpow2.f32 %v1134_v29 }
 0x50a   : > { %v4110_v30 = vpop.eup %4109 }
 0x50b   : > { %v1148_v31 = vsel %vm731_vm3, %v4110_v30, 0.0 }
 0x50c   : > { %1149 = vadd.xlane.f32.xlu0 %v1148_v31  ;;  %v4112_v33 = vpop.eup %4111 }
 0x50d   : > { %v1151_v34 = vsel %vm731_vm3, %v4112_v33, 0.0 }
 0x50e   : > { %1152 = vadd.xlane.f32.xlu1 %v1151_v34 }
 0x574   : > { %v1108_v35 = vpop.xlane.xlu0 %1107 }
 0x575   : > { %v1126_v36 = vsub.f32 %v865_v46, %v1108_v35 }
 0x577   : > { %v1136_v37 = vmul.f32 1.442695, %v1126_v36 }
 0x578   : > { %v1111_v39 = vpop.xlane.xlu0 %1110 }
 0x579   : > { %4113 = vpow2.f32 %v1136_v37  ;;  %v1127_v32 = vsub.f32 %v911_v52, %v1111_v39 }
 0x57b   : > { %v1138_v40 = vmul.f32 1.442695, %v1127_v32 }
 0x57c   : > { %v1114_v41 = vpop.xlane.xlu0 %1113  ;;  %v1117_v38 = vpop.xlane.xlu1 %1116 }
 0x57d   : > { %4115 = vpow2.f32 %v1138_v40  ;;  %v1128_v42 = vsub.f32 %v957_v62, %v1114_v41  ;;  %v1129_v43 = vsub.f32 %v1003_v63, %v1117_v38 }
 0x57f   : > { %v1140_v45 = vmul.f32 1.442695, %v1128_v42  ;;  %v1142_v47 = vmul.f32 1.442695, %v1129_v43 }
 0x581   : > { %4117 = vpow2.f32 %v1140_v45 }
 0x582   : > { %4119 = vpow2.f32 %v1142_v47 }
 0x583   : > { %v4114_v49 = vpop.eup %4113 }
 0x584   : > { %v1120_v50 = vpop.xlane.xlu0 %1119  ;;  %v1154_v51 = vsel %vm731_vm3, %v4114_v49, 0.0  ;;  %v1123_v1 = vpop.xlane.xlu1 %1122 }
 0x585   : > { %v1130_v53 = vsub.f32 %v1049_v14, %v1120_v50  ;;  %1155 = vadd.xlane.f32.xlu0 %v1154_v51  ;;  %v1131_v10 = vsub.f32 %v4598_v15, %v1123_v1 }
 0x587   : > { %v4116_v46 = vpop.eup %4115  ;;  %v1144_v54 = vmul.f32 1.442695, %v1130_v53  ;;  %v1146_v14 = vmul.f32 1.442695, %v1131_v10 }
 0x588   : > { %v1157_v52 = vsel %vm731_vm3, %v4116_v46, 0.0 }
 0x589   : > { %4121 = vpow2.f32 %v1144_v54  ;;  %1158 = vadd.xlane.f32.xlu1 %v1157_v52 }
 0x58b   : > { %v4607_v56 = vpop.eup %4117 }
 0x58c   : > { %v4609_v57 = vpop.eup %4119  ;;  %v1160_v59 = vsel %vm731_vm3, %v4607_v56, 0.0 }
 0x58d   : > { %1161 = vadd.xlane.f32.xlu0 %v1160_v59  ;;  %v1163_v61 = vsel %vm731_vm3, %v4609_v57, 0.0 }
 0x58e   : > { %1164 = vadd.xlane.f32.xlu1 %v1163_v61 }
 0x593   : > { %v4615_v62 = vpop.eup %4121 }
 0x594   : > { %v1166_v63 = vsel %vm731_vm3, %v4615_v62, 0.0 }
 0x595   : > { %1167 = vadd.xlane.f32.xlu0 %v1166_v63 }
 0x599   : > { %v1150_v2 = vpop.xlane.xlu0 %1149 }
 0x59a   : > { %4123 = vrcp.f32 %v1150_v2 }
 0x59b   : > { %v1153_v3 = vpop.xlane.xlu1 %1152 }
 0x59c   : > { %4125 = vrcp.f32 %v1153_v3 }
 0x59d   : > { %4127 = vpow2.f32 %v1146_v14 }
 0x59f   : > { %3969 = vrot.lane.b32.xlu1 %v4542_v44, %s4294_s22 }
 0x5a4   : > { %v4124_v4 = vpop.eup %4123 }
 0x5a5   : > { %v1180_v5 = vmul.f32 %v4124_v4, %v4110_v30 }
 0x5a6   : > { %v4126_v6 = vpop.eup %4125 }
 0x5a7   : > { %v1188_v7 = vpack.c.bf16 %v1180_v5, %v1180_v5  ;;  %v1181_v8 = vmul.f32 %v4126_v6, %v4112_v33  ;;  %v4630_v16 = vpop.eup %4127 }
 0x5a8   : > { %v1169_v17 = vsel %vm731_vm3, %v4630_v16, 0.0 }
 0x5a9   : > { %3661 = vmatmul.mubr.msk.bf16.vlgmr.msra.gmra.mrb[20].mxu1 %vm731_vm3, %v1188_v7  ;;  %v1189_v9 = vpack.c.bf16 %v1181_v8, %v1181_v8 }
 0x5aa   : > { %3672 = vmatprep.mubr.msk.bf16.mxu1 %vm4291_vm2, %v4290_v48 }
 0x5ab   : > { %3964 = vrot.lane.b32.xlu0 %v4542_v44, %s4292_s16  ;;  %3667 = vmatmul.mubr.msk.bf16.vlgmr.msra.gmra.mrb[24].mxu0 %vm731_vm3, %v1189_v9 }
 0x5ac   : > { %3678 = vmatprep.mubr.msk.bf16.mxu0 %vm4291_vm2, %v4290_v48 }
 0x5c3   : > { %1170 = vadd.xlane.f32.xlu1 %v1169_v17  ;;  %v4089_v17 = vld [vmem:[%s4438_s20 + $0x30] sm:$0xff]  }
 0x5d4   : > { %3974 = vrot.lane.b32.xlu1 %v4542_v44, %s4293_s21 }
 0x612   : > { %v1156_v18 = vpop.xlane.xlu0 %1155 }
 0x613   : > { %4129 = vrcp.f32 %v1156_v18 }
 0x616   : > { %v1159_v19 = vpop.xlane.xlu1 %1158 }
 0x617   : > { %4131 = vrcp.f32 %v1159_v19 }
 0x61a   : > { %v1162_v20 = vpop.xlane.xlu0 %1161 }
 0x61b   : > { %v1165_v21 = vpop.xlane.xlu1 %1164  ;;  %4133 = vrcp.f32 %v1162_v20 }
 0x61c   : > { %4135 = vrcp.f32 %v1165_v21 }
 0x61d   : > { %v4130_v23 = vpop.eup %4129 }
 0x61e   : > { %v1182_v30 = vmul.f32 %v4130_v23, %v4114_v49 }
 0x61f   : > { %v3970_v15 = vpop.permute.xlu1 %3969 }
 0x620   : > { %v3972_v26 = vunpack.i.h.bf16 %v3970_v15  ;;  %v3971_v27 = vunpack.i.l.bf16 %v3970_v15  ;;  %v1190_v32 = vpack.c.bf16 %v1182_v30, %v1182_v30 }
 0x621   : > { %v4132_v24 = vpop.eup %4131 }
 0x622   : > { %v1168_v22 = vpop.xlane.xlu0 %1167  ;;  %v1183_v31 = vmul.f32 %v4132_v24, %v4116_v46  ;;  %v728_v34 = vpack.c.bf16 %v3972_v26, %v3972_v26  ;;  %v727_v35 = vpack.c.bf16 %v3971_v27, %v3971_v27 }
 0x623   : > { %4137 = vrcp.f32 %v1168_v22 }
 0x624   : > { %v1191_v40 = vpack.c.bf16 %v1183_v31, %v1183_v31  ;;  %v1385_v38 = vsel %vm1199_vm4, %v727_v35, 0  ;;  %v1431_v42 = vsel %vm1199_vm4, %v728_v34, 0 }
 0x625   : > { %v4134_v39 = vpop.eup %4133 }
 0x626   : > { %v3965_v25 = vpop.permute.xlu0 %3964  ;;  %v4136_v41 = vpop.eup %4135  ;;  %v1184_v43 = vmul.f32 %v4134_v39, %v4607_v56 }
 0x627   : > { %v3967_v28 = vunpack.i.h.bf16 %v3965_v25  ;;  %v3966_v29 = vunpack.i.l.bf16 %v3965_v25  ;;  %v1185_v45 = vmul.f32 %v4136_v41, %v4609_v57 }
 0x628   : > { %v1192_v47 = vpack.c.bf16 %v1184_v43, %v1184_v43 }
 0x629   : > { %v726_v44 = vpack.c.bf16 %v3967_v28, %v3967_v28  ;;  %v725_v33 = vpack.c.bf16 %v3966_v29, %v3966_v29  ;;  %v1193_v49 = vpack.c.bf16 %v1185_v45, %v1185_v45 }
 0x62b   : > { %v1293_v36 = vsel %vm1199_vm4, %v725_v33, 0  ;;  %v1339_v37 = vsel %vm1199_vm4, %v726_v44, 0  ;;  %v4090_v33 = vld [vmem:[%s4438_s20 + $0x38] sm:$0xff]  }
 0x62c   : > { %3671 = vmatpush3.bf16.msra.mxu1 %v1293_v36  ;;  %3677 = vmatpush3.bf16.msra.mxu0 %v1339_v37 }
 0x62d   : > { %3682 = vmatprep.subr.bf16.mxu1 %v4290_v48  ;;  %3688 = vmatprep.subr.bf16.mxu0 %v4290_v48  ;;  %v4138_v51 = vpop.eup %4137 }
 0x62e   : > { %v1186_v52 = vmul.f32 %v4138_v51, %v4615_v62 }
 0x62f   : > { %3673 = vmatmul.mubr.msk.bf16.vlgmr.msra.gmra.mrb[24].mxu1 %vm731_vm3, %v1190_v32  ;;  %3679 = vmatmul.mubr.msk.bf16.vlgmr.msra.gmra.mrb[28].mxu0 %vm731_vm3, %v1191_v40 }
 0x630   : > { %3683 = vmatpush3.bf16.msra.mxu1 %v1385_v38  ;;  %3689 = vmatpush3.bf16.msra.mxu0 %v1431_v42  ;;  %v1194_v1 = vpack.c.bf16 %v1186_v52, %v1186_v52 }
 0x631   : > { %3684 = vmatprep.mubr.msk.bf16.mxu1 %vm4291_vm2, %v4290_v48  ;;  %3690 = vmatprep.mubr.msk.bf16.mxu0 %vm4291_vm2, %v4290_v48 }
 0x632   : > { %3694 = vmatprep.subr.bf16.mxu1 %v4290_v48  ;;  %3700 = vmatprep.subr.bf16.mxu0 %v4290_v48 }
 0x637   : > { %3685 = vmatmul.mubr.msk.bf16.vlgmr.msra.gmra.mrb[28].mxu1 %vm731_vm3, %v1192_v47  ;;  %3691 = vmatmul.mubr.msk.bf16.vlgmr.msra.gmra.mrb[32].mxu0 %vm731_vm3, %v1193_v49 }
 0x638   : > { %3696 = vmatprep.mubr.msk.bf16.mxu1 %vm4291_vm2, %v4290_v48  ;;  %3702 = vmatprep.mubr.msk.bf16.mxu0 %vm4291_vm2, %v4290_v48 }
 0x650   : > { %v1171_v50 = vpop.xlane.xlu1 %1170 }
 0x651   : > { %4139 = vrcp.f32 %v1171_v50 }
 0x654   : > { %v3975_v53 = vpop.permute.xlu1 %3974 }
 0x655   : > { %v3977_v46 = vunpack.i.h.bf16 %v3975_v53  ;;  %v3976_v54 = vunpack.i.l.bf16 %v3975_v53 }
 0x657   : > { %v730_v56 = vpack.c.bf16 %v3977_v46, %v3977_v46  ;;  %v729_v57 = vpack.c.bf16 %v3976_v54, %v3976_v54 }
 0x659   : > { %v1477_v59 = vsel %vm1199_vm4, %v729_v57, 0  ;;  %v1523_v61 = vsel %vm1199_vm4, %v730_v56, 0 }
 0x65a   : > { %3695 = vmatpush3.bf16.msra.mxu1 %v1477_v59  ;;  %3701 = vmatpush3.bf16.msra.mxu0 %v1523_v61 }
 0x65b   : > { %v4140_v63 = vpop.eup %4139  ;;  %3706 = vmatprep.subr.bf16.mxu1 %v4290_v48  ;;  %3714 = vmatprep.subr.bf16.mxu0 %v4290_v48 }
 0x65c   : > { %v1187_v2 = vmul.f32 %v4140_v63, %v4630_v16 }
 0x65d   : > { %3697 = vmatmul.mubr.msk.bf16.vlgmr.msra.gmra.mrb[32].mxu1 %vm731_vm3, %v1194_v1  ;;  %v1605_v1 = vsub.s32 3, %v4489_v58 }
 0x65e   : > { %v1195_v62 = vpack.c.bf16 %v1187_v2, %v1187_v2  ;;  %3710 = vmatprep.mubr.msk.bf16.mxu1 %vm4291_vm2, %v4290_v48  ;;  %3707 = vmatpush3.bf16.msra.mxu1 %v4089_v17 }
 0x65f   : > { %3708 = vmatprep.subr.bf16.mxu1 %v4290_v48  ;;  %v1606_v2 = vrot.slane %v4520_v13, %v1605_v1 }
 0x660   : > { %3703 = vmatmul.mubr.msk.bf16.vlgmr.msra.gmra.mrb[36].mxu0 %vm731_vm3, %v1195_v62 }
 0x661   : > { %3718 = vmatprep.mubr.msk.bf16.mxu0 %vm4291_vm2, %v4290_v48 }
 0x662   : > { %3709 = vmatpush3.bf16.msra.mxu1 %v4090_v33  ;;  %v4097_v33 = vld [vmem:[%s4438_s20 + $0x60] sm:$0xff]  }
 0x67c   : > { %v1237_v3 = vpop.f32.mrb[20].mxu1 }
 0x67d   : > { %v3662_v4 = vpop.f32.mrb[21].mxu1 }
 0x67e   : > { %v1240_v5 = vpop.f32.mrb[22].mxu1  ;;  %v1283_v6 = vpop.f32.mrb[24].mxu0 }
 0x67f   : > { %v3663_v7 = vpop.f32.mrb[23].mxu1  ;;  %v3668_v8 = vpop.f32.mrb[25].mxu0 }
 0x680   : > { %v1286_v9 = vpop.f32.mrb[26].mxu0 }
 0x681   : > { %v3669_v10 = vpop.f32.mrb[27].mxu0 }
 0x682   : > { %v4186_v10 = vld [vmem:[#allocation2 + $0x8] sm:$0xff] }
 0x702   : > { %v1329_v14 = vpop.f32.mrb[24].mxu1  ;;  %v1375_v16 = vpop.f32.mrb[28].mxu0 }
 0x703   : > { %v3978_v18 = vpack.i.bf16 %v1375_v16, %v1329_v14  ;;  %v3674_v19 = vpop.f32.mrb[25].mxu1  ;;  %v3680_v20 = vpop.f32.mrb[29].mxu0 }
 0x704   : > { %v1332_v21 = vpop.f32.mrb[26].mxu1  ;;  %v1378_v22 = vpop.f32.mrb[30].mxu0 }
 0x705   : > { %v3675_v15 = vpop.f32.mrb[27].mxu1  ;;  %3979 = vrot.lane.b32.xlu1 %v3978_v18, %s4295_s27  ;;  %v3681_v23 = vpop.f32.mrb[31].mxu0 }
 0x70a   : > { %v1421_v24 = vpop.f32.mrb[28].mxu1  ;;  %v1467_v25 = vpop.f32.mrb[32].mxu0 }
 0x70b   : > { %v3983_v26 = vpack.i.bf16 %v1467_v25, %v1421_v24  ;;  %v3686_v27 = vpop.f32.mrb[29].mxu1  ;;  %v3692_v28 = vpop.f32.mrb[33].mxu0 }
 0x70c   : > { %v1424_v29 = vpop.f32.mrb[30].mxu1  ;;  %v1470_v30 = vpop.f32.mrb[34].mxu0  ;;  %v4091_v27 = vld [vmem:[%s4438_s20 + $0x50] sm:$0xff]   ;;  %v4092_v28 = vld [vmem:[%s4438_s20 + $0x58] sm:$0xff]  }
 0x70d   : > { %v3687_v31 = vpop.f32.mrb[31].mxu1  ;;  %3984 = vrot.lane.b32.xlu0 %v3983_v26, %s4296_s19  ;;  %v3693_v44 = vpop.f32.mrb[35].mxu0  ;;  %3722 = vmatprep.subr.bf16.mxu1 %v4091_v27  ;;  %v4093_v29 = vld [vmem:[%s5019_s1] sm:$0xff]   ;;  %v4094_v30 = vld [vmem:[%s5019_s1 + $0x8] sm:$0xff]  }
 0x70e   : > { %v4095_v31 = vld [vmem:[%s4438_s20 + $0x40] sm:$0xff]   ;;  %v4096_v44 = vld [vmem:[%s4438_s20 + $0x48] sm:$0xff]  }
 0x70f   : > { %3715 = vmatpush3.bf16.msra.mxu0 %v4095_v31 }
 0x710   : > { %3716 = vmatprep.subr.bf16.mxu0 %v4290_v48 }
 0x713   : > { %3717 = vmatpush3.bf16.msra.mxu0 %v4096_v44 }
 0x714   : > { %3730 = vmatprep.subr.bf16.mxu0 %v4097_v33 }
 0x730   : > { %v1513_v34 = vpop.f32.mrb[32].mxu1 }
 0x731   : > { %v3698_v35 = vpop.f32.mrb[33].mxu1 }
 0x732   : > { %v1516_v36 = vpop.f32.mrb[34].mxu1 }
 0x733   : > { %v3699_v37 = vpop.f32.mrb[35].mxu1  ;;  %v1559_v39 = vpop.f32.mrb[36].mxu0 }
 0x734   : > { %v3988_v32 = vpack.i.bf16 %v1559_v39, %v1513_v34  ;;  %v3704_v40 = vpop.f32.mrb[37].mxu0 }
 0x735   : > { %v1562_v41 = vpop.f32.mrb[38].mxu0 }
 0x736   : > { %3989 = vrot.lane.b32.xlu1 %v3988_v32, %s4297_s23  ;;  %v3705_v38 = vpop.f32.mrb[39].mxu0  ;;  %v1694_v41 = vrot.slane %v4493_v60, %v1605_v1 }
 0x777   : > { %v3980_v42 = vpop.permute.xlu1 %3979 }
 0x778   : > { %v3982_v45 = vunpack.i.h.bf16 %v3980_v42  ;;  %v3981_v47 = vunpack.i.l.bf16 %v3980_v42  ;;  %v1699_v42 = vsub.s32 7, %v4489_v58 }
 0x77a   : > { %v1590_v53 = vsel %vm731_vm3, %v1283_v6, %v3982_v45  ;;  %v1589_v46 = vsel %vm731_vm3, %v1237_v3, %v3981_v47  ;;  %v4185_v6 = vld [vmem:[#allocation2] sm:$0xff] }
 0x77f   : > { %v3985_v43 = vpop.permute.xlu0 %3984 }
 0x780   : > { %v3987_v49 = vunpack.i.h.bf16 %v3985_v43  ;;  %v3986_v50 = vunpack.i.l.bf16 %v3985_v43 }
 0x782   : > { %v1593_v56 = vsel %vm1591_vm5, %v1590_v53, %v3987_v49  ;;  %v1592_v57 = vsel %vm1591_vm5, %v1589_v46, %v3986_v50  ;;  %v1700_v49 = vrot.slane %v4493_v60, %v1699_v42  ;;  %v1780_v60 = vsub.s32 5, %v4489_v58 }
 0x7a8   : > { %v3990_v51 = vpop.permute.xlu1 %3989 }
 0x7a9   : > { %v3992_v54 = vunpack.i.h.bf16 %v3990_v51  ;;  %v3991_v52 = vunpack.i.l.bf16 %v3990_v51 }
 0x7ab   : > { %v1596_v59 = vsel %vm1594_vm6, %v1593_v56, %v3992_v54  ;;  %v1595_v61 = vsel %vm1594_vm6, %v1592_v57, %v3991_v52  ;;  %v4098_v54 = vld [vmem:[%s4438_s20 + $0x68] sm:$0xff]   ;;  %v1781_v52 = vrot.slane %v4520_v13, %v1780_v60 }
 0x7ac   : > { %v1597_v63 = vpack.c.bf16 %v1596_v59, %v1595_v61 }
 0x7ae   : > { %3711 = vmatmul.mubr.msk.bf16.vlgmr.msra.gmra.mrb[36].mxu1 %vm416_vm1, %v1597_v63 }
 0x7af   : > { %3723 = vmatpush3.bf16.msra.mxu1 %v4091_v27  ;;  %3726 = vmatprep.mubr.msk.bf16.mxu1 %vm416_vm1, %v4093_v29 }
 0x7b0   : > { %3724 = vmatprep.subr.bf16.mxu1 %v4092_v28 }
 0x7b3   : > { %3725 = vmatpush3.bf16.msra.mxu1 %v4092_v28 }
 0x7b4   : > { %3738 = vmatprep.subr.bf16.mxu1 %v4290_v48 }
 0x7b6   : > { %3727 = vmatmul.mubr.msk.bf16.vlgmr.msra.gmra.mrb[40].mxu1 %vm416_vm1, %v4094_v30 }
 0x7b7   : > { %3740 = vmatprep.mubr.msk.bf16.mxu1 %vm4291_vm2, %v4290_v48 }
 0x881   : > { %v1656_v62 = vpop.f32.mrb[36].mxu1 }
 0x882   : > { %v1657_v4 = vadd.f32 %v1656_v62, %v1606_v2  ;;  %v3712_v3 = vpop.f32.mrb[37].mxu1 }
 0x883   : > { %v1659_v5 = vpop.f32.mrb[38].mxu1 }
 0x884   : > { %v4685_v7 = vadd.f32 %v4185_v6, %v1657_v4  ;;  %v1660_v8 = vadd.f32 %v1659_v5, %v1606_v2  ;;  %v3713_v9 = vpop.f32.mrb[39].mxu1 }
 0x886   : > { %v4687_v14 = vadd.f32 %v4186_v10, %v1660_v8  ;;  %v1665_v16 = vsel %vm416_vm1, %v4685_v7, 0.0  ;;  %v1715_v10 = vsub.s32 4, %v4489_v58  ;;  %v4189_v58 = vld [vmem:[%s5024_s6] sm:$0xff] (!%p3478_p7)  }
 0x887   : > { %1666 = vadd.xlane.f32.xlu0 %v1665_v16 }
 0x888   : > { %v1668_v17 = vsel %vm416_vm1, %v4687_v14, 0.0 }
 0x889   : > { %1669 = vadd.xlane.f32.xlu1 %v1668_v17  ;;  %v3728_v56 = vpop.f32.mrb[40].mxu1  ;;  %v1716_v17 = vrot.slane %v4520_v13, %v1715_v10 }
 0x88a   : > { %v1853_v57 = vadd.f32 %v3728_v56, %v1781_v52  ;;  %v1844_v59 = vpop.f32.mrb[41].mxu1 }
 0x88b   : > { %v1845_v61 = vadd.f32 %v1844_v59, %v1781_v52  ;;  %v3729_v63 = vpop.f32.mrb[42].mxu1 }
 0x88c   : > { %v1856_v1 = vadd.f32 %v3729_v63, %v1781_v52  ;;  %v1847_v2 = vpop.f32.mrb[43].mxu1 }
 0x88d   : > { %v1848_v62 = vadd.f32 %v1847_v2, %v1781_v52 }
 0x88e   : > { %v3998_v4 = vpack.i.bf16 %v1856_v1, %v1853_v57  ;;  %v2000_v6 = vpack.c.bf16 %v1856_v1, %v1853_v57 }
 0x88f   : > { %v3993_v3 = vpack.i.bf16 %v1848_v62, %v1845_v61  ;;  %v1999_v5 = vpack.c.bf16 %v1848_v62, %v1845_v61 }
 0x890   : > { %v2105_v9 = vsel %vm731_vm3, %v2000_v6, 0 }
 0x891   : > { %v2059_v8 = vsel %vm731_vm3, %v1999_v5, 0 }
 0x892   : > { %3739 = vmatpush3.bf16.xpose.msra.mxu1 %v2059_v8  ;;  %v4768_v8 = vld [vmem:[%s4449_s28] sm:$0xff] }
 0x893   : > { %3750 = vmatprep.subr.bf16.mxu1 %v4290_v48 }
 0x89a   : > { %3999 = vrot.lane.b32.xlu1 %v3998_v4, %s4292_s16 }
 0x89e   : > { %4004 = vrot.lane.b32.xlu1 %v3993_v3, %s4294_s22 }
 0x914   : > { %v1667_v18 = vpop.xlane.xlu0 %1666 }
 0x915   : > { %v1671_v19 = vmul.f32 0.03125, %v1667_v18 }
 0x916   : > { %v1670_v20 = vpop.xlane.xlu1 %1669 }
 0x917   : > { %v1673_v21 = vsub.f32 %v4685_v7, %v1671_v19  ;;  %v1672_v22 = vmul.f32 0.03125, %v1670_v20 }
 0x919   : > { %v1674_v15 = vsub.f32 %v4687_v14, %v1672_v22  ;;  %v1675_v23 = vmul.f32 %v1673_v21, %v1673_v21 }
 0x91a   : > { %v4000_v20 = vpop.permute.xlu1 %3999 }
 0x91b   : > { %v1677_v24 = vsel %vm416_vm1, %v1675_v23, 0.0  ;;  %v1676_v25 = vmul.f32 %v1674_v15, %v1674_v15  ;;  %v4002_v22 = vunpack.i.h.bf16 %v4000_v20 }
 0x91c   : > { %1678 = vadd.xlane.f32.xlu0 %v1677_v24 }
 0x91d   : > { %v1680_v26 = vsel %vm416_vm1, %v1676_v25, 0.0 }
 0x920   : > { %1681 = vadd.xlane.f32.xlu0 %v1680_v26 }
 0x936   : > { %3994 = vrot.lane.b32.xlu0 %v3993_v3, %s4292_s16 }
 0x93a   : > { %4009 = vrot.lane.b32.xlu0 %v3998_v4, %s4294_s22 }
 0x93e   : > { %4014 = vrot.lane.b32.xlu0 %v3993_v3, %s4293_s21 }
 0x9a9   : > { %v1679_v34 = vpop.xlane.xlu0 %1678 }
 0x9aa   : > { %v1683_v35 = vmul.f32 0.03125, %v1679_v34 }
 0x9ac   : > { %v1685_v36 = vadd.f32 1e-05, %v1683_v35 }
 0x9ad   : > { %v1682_v37 = vpop.xlane.xlu0 %1681 }
 0x9ae   : > { %4141 = vrsqrt.f32 %v1685_v36  ;;  %v1684_v39 = vmul.f32 0.03125, %v1682_v37 }
 0x9b0   : > { %v1686_v32 = vadd.f32 1e-05, %v1684_v39 }
 0x9b1   : > { %v3995_v16 = vpop.permute.xlu0 %3994 }
 0x9b2   : > { %4143 = vrsqrt.f32 %v1686_v32  ;;  %v3997_v18 = vunpack.i.h.bf16 %v3995_v16  ;;  %v3996_v19 = vunpack.i.l.bf16 %v3995_v16 }
 0x9b4   : > { %v2001_v25 = vpack.c.bf16 %v3997_v18, %v3996_v19 }
 0x9b8   : > { %v4142_v40 = vpop.eup %4141 }
 0x9b9   : > { %v1689_v38 = vmul.f32 %v4142_v40, %v1673_v21  ;;  %v4005_v40 = vpop.permute.xlu1 %4004 }
 0x9bb   : > { %v1695_v45 = vmul.f32 %v1694_v41, %v1689_v38 }
 0x9bc   : > { %v4144_v43 = vpop.eup %4143 }
 0x9bd   : > { %v1690_v47 = vmul.f32 %v4144_v43, %v1674_v15  ;;  %v1701_v51 = vadd.f32 %v1700_v49, %v1695_v45  ;;  %v4001_v15 = vunpack.i.l.bf16 %v4000_v20  ;;  %v4007_v45 = vunpack.i.h.bf16 %v4005_v40 }
 0x9bf   : > { %v1696_v50 = vmul.f32 %v1694_v41, %v1690_v47  ;;  %v4010_v41 = vpop.permute.xlu0 %4009  ;;  %v4006_v47 = vunpack.i.l.bf16 %v4005_v40 }
 0x9c0   : > { %v4012_v38 = vunpack.i.h.bf16 %v4010_v41  ;;  %v4011_v43 = vunpack.i.l.bf16 %v4010_v41 }
 0x9c1   : > { %v1702_v53 = vadd.f32 %v1700_v49, %v1696_v50 }
 0x9c2   : > { %v2004_v50 = vpack.c.bf16 %v4012_v38, %v4011_v43 }
 0x9c3   : > { %v1703_v46 = vpack.c.bf16 %v1702_v53, %v1701_v51  ;;  %v2003_v51 = vpack.c.bf16 %v4007_v45, %v4006_v47 }
 0x9c4   : > { %v2289_v1 = vsel %vm731_vm3, %v2004_v50, 0 }
 0x9c5   : > { %3719 = vmatmul.mubr.msk.bf16.vlgmr.msra.gmra.mrb[40].mxu0 %vm416_vm1, %v1703_v46  ;;  %v2243_v63 = vsel %vm731_vm3, %v2003_v51, 0 }
 0x9c6   : > { %3731 = vmatpush3.bf16.msra.mxu0 %v4097_v33  ;;  %3734 = vmatprep.mubr.msk.bf16.mxu0 %vm416_vm1, %v4093_v29  ;;  %v2151_v33 = vsel %vm731_vm3, %v2001_v25, 0 }
 0x9c7   : > { %3732 = vmatprep.subr.bf16.mxu0 %v4098_v54 }
 0x9ca   : > { %3733 = vmatpush3.bf16.msra.mxu0 %v4098_v54  ;;  %v4015_v54 = vpop.permute.xlu0 %4014 }
 0x9cb   : > { %3744 = vmatprep.subr.bf16.mxu0 %v4290_v48  ;;  %v4017_v59 = vunpack.i.h.bf16 %v4015_v54  ;;  %v4016_v61 = vunpack.i.l.bf16 %v4015_v54 }
 0x9cd   : > { %3735 = vmatmul.mubr.msk.bf16.vlgmr.msra.gmra.mrb[44].mxu0 %vm416_vm1, %v4094_v30  ;;  %v2002_v30 = vpack.c.bf16 %v4002_v22, %v4001_v15  ;;  %v2005_v3 = vpack.c.bf16 %v4017_v59, %v4016_v61 }
 0x9ce   : > { %3746 = vmatprep.mubr.msk.bf16.mxu0 %vm4291_vm2, %v4290_v48 }
 0x9cf   : > { %v2197_v35 = vsel %vm731_vm3, %v2002_v30, 0  ;;  %v2335_v20 = vsel %vm731_vm3, %v2005_v3, 0 }
 0x9d3   : > { %3745 = vmatpush3.bf16.xpose.msra.mxu0 %v2105_v9  ;;  %v1867_v9 = vrot.slane %v4768_v8, %v452_v0 }
 0x9d4   : > { %3756 = vmatprep.subr.bf16.mxu0 %v4290_v48 }
 0xa98   : > { %v1766_v21 = vpop.f32.mrb[40].mxu0 }
 0xa99   : > { %v1767_v23 = vadd.f32 %v1766_v21, %v1716_v17  ;;  %v3720_v24 = vpop.f32.mrb[41].mxu0 }
 0xa9a   : > { %v1769_v26 = vpop.f32.mrb[42].mxu0 }
 0xa9b   : > { %v1929_v27 = vmul.f32 0.35355338, %v1767_v23  ;;  %v1770_v28 = vadd.f32 %v1769_v26, %v1716_v17  ;;  %v3721_v29 = vpop.f32.mrb[43].mxu0 }
 0xa9d   : > { %v1951_v31 = vpack.c.bf16 %v1929_v27, %v1929_v27  ;;  %v1930_v44 = vmul.f32 0.35355338, %v1770_v28 }
 0xa9f   : > { %v1952_v34 = vpack.c.bf16 %v1930_v44, %v1930_v44  ;;  %3741 = vmatmul.mubr.msk.bf16.vlgmr.msra.gmra.mrb[44].mxu1 %vm731_vm3, %v1951_v31  ;;  %v4033_v13 = vpack.i.bf16 %v1930_v44, %v1929_v27 }
 0xaa0   : > { %3751 = vmatpush3.bf16.xpose.msra.mxu1 %v2151_v33  ;;  %3752 = vmatprep.mubr.msk.bf16.mxu1 %vm4291_vm2, %v4290_v48  ;;  %v3736_v36 = vpop.f32.mrb[44].mxu0 }
 0xaa1   : > { %4034 = vrot.lane.b32.xlu0 %v4033_v13, %s4293_s21  ;;  %4019 = vrot.lane.b32.xlu1 %v4033_v13, %s4292_s16  ;;  %v1914_v37 = vpop.f32.mrb[45].mxu0  ;;  %v4777_v22 = vadd.f32 %v3736_v36, %v1867_v9 }
 0xaa2   : > { %3747 = vmatmul.mubr.msk.bf16.vlgmr.msra.gmra.mrb[48].mxu0 %vm731_vm3, %v1952_v34  ;;  %3762 = vmatprep.subr.bf16.mxu1 %v4290_v48  ;;  %v3737_v39 = vpop.f32.mrb[46].mxu0  ;;  %v4779_v15 = vadd.f32 %v1914_v37, %v1867_v9 }
 0xaa3   : > { %3757 = vmatpush3.bf16.xpose.msra.mxu0 %v2197_v35  ;;  %3758 = vmatprep.mubr.msk.bf16.mxu0 %vm4291_vm2, %v4290_v48  ;;  %v1917_v32 = vpop.f32.mrb[47].mxu0  ;;  %v4781_v23 = vadd.f32 %v3737_v39, %v1867_v9 }
 0xaa4   : > { %3768 = vmatprep.subr.bf16.mxu0 %v4290_v48  ;;  %v4783_v0 = vadd.f32 %v1917_v32, %v1867_v9 }
 0xaa5   : > { %4024 = vrot.lane.b32.xlu1 %v4033_v13, %s4294_s22  ;;  %v2048_v27 = vpack.c.bf16 %v4781_v23, %v4777_v22 }
 0xaa6   : > { %v2047_v26 = vpack.c.bf16 %v4783_v0, %v4779_v15 }
 0xaa9   : > { %4029 = vrot.lane.b32.xlu1 %v3998_v4, %s4293_s21 }
 0xb13   : > { %v4020_v49 = vpop.permute.xlu1 %4019  ;;  %v4035_v19 = vpop.permute.xlu0 %4034 }
 0xb14   : > { %v4022_v53 = vunpack.i.h.bf16 %v4020_v49  ;;  %v4021_v46 = vunpack.i.l.bf16 %v4020_v49  ;;  %v4037_v24 = vunpack.i.h.bf16 %v4035_v19  ;;  %v4036_v25 = vunpack.i.l.bf16 %v4035_v19 }
 0xb16   : > { %v1954_v52 = vpack.c.bf16 %v4022_v53, %v4022_v53  ;;  %v1953_v56 = vpack.c.bf16 %v4021_v46, %v4021_v46  ;;  %v1958_v28 = vpack.c.bf16 %v4037_v24, %v4037_v24  ;;  %v1957_v29 = vpack.c.bf16 %v4036_v25, %v4036_v25 }
 0xb17   : > { %v4025_v57 = vpop.permute.xlu1 %4024  ;;  %v4825_v24 = vpack.i.bf16 %v4783_v0, %v4779_v15 }
 0xb18   : > { %3753 = vmatmul.mubr.msk.bf16.vlgmr.msra.gmra.mrb[48].mxu1 %vm731_vm3, %v1953_v56  ;;  %3759 = vmatmul.mubr.msk.bf16.vlgmr.msra.gmra.mrb[52].mxu0 %vm731_vm3, %v1954_v52  ;;  %v4027_v2 = vunpack.i.h.bf16 %v4025_v57  ;;  %v4026_v62 = vunpack.i.l.bf16 %v4025_v57 }
 0xb19   : > { %3763 = vmatpush3.bf16.xpose.msra.mxu1 %v2243_v63  ;;  %3769 = vmatpush3.bf16.xpose.msra.mxu0 %v2289_v1 }
 0xb1a   : > { %3764 = vmatprep.mubr.msk.bf16.mxu1 %vm4291_vm2, %v4290_v48  ;;  %3770 = vmatprep.mubr.msk.bf16.mxu0 %vm4291_vm2, %v4290_v48  ;;  %v1956_v16 = vpack.c.bf16 %v4027_v2, %v4027_v2  ;;  %v1955_v17 = vpack.c.bf16 %v4026_v62, %v4026_v62 }
 0xb1b   : > { %v4030_v4 = vpop.permute.xlu1 %4029  ;;  %3774 = vmatprep.subr.bf16.mxu1 %v4290_v48  ;;  %3780 = vmatprep.subr.bf16.mxu0 %v4290_v48 }
 0xb1c   : > { %v4032_v5 = vunpack.i.h.bf16 %v4030_v4  ;;  %v4031_v6 = vunpack.i.l.bf16 %v4030_v4 }
 0xb1e   : > { %v2006_v18 = vpack.c.bf16 %v4032_v5, %v4031_v6 }
 0xb20   : > { %3765 = vmatmul.mubr.msk.bf16.vlgmr.msra.gmra.mrb[52].mxu1 %vm731_vm3, %v1955_v17  ;;  %3771 = vmatmul.mubr.msk.bf16.vlgmr.msra.gmra.mrb[56].mxu0 %vm731_vm3, %v1956_v16  ;;  %v2381_v21 = vsel %vm731_vm3, %v2006_v18, 0 }
 0xb21   : > { %3775 = vmatpush3.bf16.xpose.msra.mxu1 %v2335_v20  ;;  %3781 = vmatpush3.bf16.xpose.msra.mxu0 %v2381_v21 }
 0xb22   : > { %3776 = vmatprep.mubr.msk.bf16.mxu1 %vm4291_vm2, %v4290_v48  ;;  %3782 = vmatprep.mubr.msk.bf16.mxu0 %vm4291_vm2, %v4290_v48 }
 0xb23   : > { %3786 = vmatprep.subr.bf16.mxu1 %v4290_v48  ;;  %3792 = vmatprep.subr.bf16.mxu0 %v4290_v48 }
 0xb28   : > { %3777 = vmatmul.mubr.msk.bf16.vlgmr.msra.gmra.mrb[56].mxu1 %vm731_vm3, %v1957_v29  ;;  %3783 = vmatmul.mubr.msk.bf16.vlgmr.msra.gmra.mrb[60].mxu0 %vm731_vm3, %v1958_v28 }
 0xb29   : > { %3787 = vmatpush3.bf16.msra.mxu1 %v2047_v26  ;;  %3793 = vmatpush3.bf16.msra.mxu0 %v2048_v27 }
 0xb2a   : > { %3794 = vmatprep.mubr.msk.bf16.mxu0 %vm4291_vm2, %v4290_v48  ;;  %3788 = vmatprep.mubr.msk.bf16.mxu1 %vm4291_vm2, %v4290_v48 }
 0xb2b   : > { %3798 = vmatprep.subr.bf16.mxu1 %v4290_v48  ;;  %3804 = vmatprep.subr.bf16.mxu0 %v4290_v48 }
 0xb72   : > { %v2095_v30 = vpop.f32.mrb[44].mxu1 }
 0xb73   : > { %v3742_v31 = vpop.f32.mrb[45].mxu1  ;;  %v2423_v44 = vsel %vm1591_vm5, %v2095_v30, -inf }
 0xb74   : > { %v2098_v33 = vpop.f32.mrb[46].mxu1  ;;  %2424 = vmax.xlane.f32.xlu1 %v2423_v44 }
 0xb75   : > { %v2141_v34 = vpop.f32.mrb[48].mxu0  ;;  %v3743_v13 = vpop.f32.mrb[47].mxu1 }
 0xb76   : > { %v3748_v35 = vpop.f32.mrb[49].mxu0  ;;  %v2426_v36 = vsel %vm1591_vm5, %v2141_v34, -inf }
 0xb77   : > { %2427 = vmax.xlane.f32.xlu0 %v2426_v36  ;;  %v2144_v37 = vpop.f32.mrb[50].mxu0 }
 0xb78   : > { %v3749_v39 = vpop.f32.mrb[51].mxu0 }
 0xbeb   : > { %v2187_v32 = vpop.f32.mrb[48].mxu1  ;;  %v2233_v40 = vpop.f32.mrb[52].mxu0 }
 0xbec   : > { %v3754_v41 = vpop.f32.mrb[49].mxu1  ;;  %v3760_v38 = vpop.f32.mrb[53].mxu0  ;;  %v2429_v43 = vsel %vm1591_vm5, %v2187_v32, -inf  ;;  %v2432_v51 = vsel %vm1591_vm5, %v2233_v40, -inf }
 0xbed   : > { %v2190_v45 = vpop.f32.mrb[50].mxu1  ;;  %2430 = vmax.xlane.f32.xlu0 %v2429_v43  ;;  %v2236_v47 = vpop.f32.mrb[54].mxu0 }
 0xbee   : > { %v3755_v49 = vpop.f32.mrb[51].mxu1  ;;  %v3761_v50 = vpop.f32.mrb[55].mxu0 }
 0xbf1   : > { %2433 = vmax.xlane.f32.xlu0 %v2432_v51 }
 0xbf3   : > { %v4807_v53 = vpop.f32.mrb[52].mxu1  ;;  %v4809_v46 = vpop.f32.mrb[56].mxu0 }
 0xbf4   : > { %v3766_v54 = vpop.f32.mrb[53].mxu1  ;;  %v3772_v52 = vpop.f32.mrb[57].mxu0  ;;  %v2435_v56 = vsel %vm1591_vm5, %v4807_v53, -inf  ;;  %v2438_v57 = vsel %vm1591_vm5, %v4809_v46, -inf }
 0xbf5   : > { %2436 = vmax.xlane.f32.xlu1 %v2435_v56  ;;  %v2282_v59 = vpop.f32.mrb[54].mxu1  ;;  %2439 = vmax.xlane.f32.xlu0 %v2438_v57  ;;  %v2328_v61 = vpop.f32.mrb[58].mxu0 }
 0xbf6   : > { %v3767_v63 = vpop.f32.mrb[55].mxu1  ;;  %v3773_v1 = vpop.f32.mrb[59].mxu0 }
 0xbfb   : > { %v4815_v2 = vpop.f32.mrb[56].mxu1  ;;  %v4817_v62 = vpop.f32.mrb[60].mxu0 }
 0xbfc   : > { %v3778_v4 = vpop.f32.mrb[57].mxu1  ;;  %v3784_v3 = vpop.f32.mrb[61].mxu0  ;;  %v2441_v5 = vsel %vm1591_vm5, %v4815_v2, -inf  ;;  %v2444_v6 = vsel %vm1591_vm5, %v4817_v62, -inf }
 0xbfd   : > { %2442 = vmax.xlane.f32.xlu1 %v2441_v5  ;;  %v2374_v9 = vpop.f32.mrb[58].mxu1  ;;  %2445 = vmax.xlane.f32.xlu0 %v2444_v6  ;;  %v2420_v16 = vpop.f32.mrb[62].mxu0 }
 0xbfe   : > { %v3779_v17 = vpop.f32.mrb[59].mxu1  ;;  %v3785_v18 = vpop.f32.mrb[63].mxu0 }
 0xc01   : > { %v2425_v27 = vpop.xlane.xlu1 %2424 }
 0xc02   : > { %v2447_v28 = vsub.f32 %v2095_v30, %v2425_v27 }
 0xc04   : > { %v2428_v19 = vpop.xlane.xlu0 %2427  ;;  %v2455_v29 = vmul.f32 1.442695, %v2447_v28 }
 0xc05   : > { %v2448_v20 = vsub.f32 %v2141_v34, %v2428_v19 }
 0xc07   : > { %v2457_v21 = vmul.f32 1.442695, %v2448_v20 }
 0xc09   : > { %4145 = vpow2.f32 %v2457_v21 }
 0xc0a   : > { %4147 = vpow2.f32 %v2455_v29 }
 0xc0e   : > { %4039 = vrot.lane.b32.xlu1 %v4825_v24, %s4292_s16 }
 0xc13   : > { %v4146_v25 = vpop.eup %4145 }
 0xc14   : > { %v2474_v26 = vsel %vm1591_vm5, %v4146_v25, 0.0  ;;  %v4148_v31 = vpop.eup %4147 }
 0xc15   : > { %2475 = vadd.xlane.f32.xlu0 %v2474_v26  ;;  %v2471_v44 = vsel %vm1591_vm5, %v4148_v31, 0.0 }
 0xc32   : > { %2472 = vadd.xlane.f32.xlu1 %v2471_v44 }
 0xc7a   : > { %v2431_v33 = vpop.xlane.xlu0 %2430 }
 0xc7b   : > { %v2449_v34 = vsub.f32 %v2187_v32, %v2431_v33 }
 0xc7d   : > { %v2459_v13 = vmul.f32 1.442695, %v2449_v34 }
 0xc7e   : > { %v2434_v15 = vpop.xlane.xlu0 %2433 }
 0xc7f   : > { %4149 = vpow2.f32 %v2459_v13  ;;  %v2450_v0 = vsub.f32 %v2233_v40, %v2434_v15  ;;  %v4053_v40 = vpack.i.bf16 %v4781_v23, %v4777_v22 }
 0xc81   : > { %v2461_v35 = vmul.f32 1.442695, %v2450_v0 }
 0xc82   : > { %v2440_v41 = vpop.xlane.xlu0 %2439  ;;  %v2437_v43 = vpop.xlane.xlu1 %2436 }
 0xc83   : > { %4151 = vpow2.f32 %v2461_v35  ;;  %v2451_v47 = vsub.f32 %v4807_v53, %v2437_v43  ;;  %v2452_v49 = vsub.f32 %v4809_v46, %v2440_v41 }
 0xc85   : > { %v2463_v52 = vmul.f32 1.442695, %v2451_v47  ;;  %v2465_v57 = vmul.f32 1.442695, %v2452_v49 }
 0xc89   : > { %v4831_v36 = vpop.eup %4149 }
 0xc8a   : > { %v2477_v37 = vsel %vm1591_vm5, %v4831_v36, 0.0  ;;  %v2446_v32 = vpop.xlane.xlu0 %2445  ;;  %v2443_v50 = vpop.xlane.xlu1 %2442 }
 0xc8b   : > { %2478 = vadd.xlane.f32.xlu1 %v2477_v37  ;;  %v2453_v56 = vsub.f32 %v4815_v2, %v2443_v50  ;;  %v2454_v22 = vsub.f32 %v4817_v62, %v2446_v32 }
 0xc8d   : > { %v4835_v30 = vpop.eup %4151  ;;  %v2467_v23 = vmul.f32 1.442695, %v2453_v56  ;;  %v2469_v53 = vmul.f32 1.442695, %v2454_v22 }
 0xc8e   : > { %v2480_v39 = vsel %vm1591_vm5, %v4835_v30, 0.0  ;;  %v4040_v46 = vpop.permute.xlu1 %4039 }
 0xc8f   : > { %2481 = vadd.xlane.f32.xlu0 %v2480_v39  ;;  %v4042_v9 = vunpack.i.h.bf16 %v4040_v46  ;;  %v4041_v16 = vunpack.i.l.bf16 %v4040_v46 }
 0xc91   : > { %v2049_v19 = vpack.c.bf16 %v4042_v9, %v4041_v16 }
 0xc9c   : > { %4049 = vrot.lane.b32.xlu1 %v4825_v24, %s4294_s22 }
 0xca0   : > { %4054 = vrot.lane.b32.xlu1 %v4053_v40, %s4294_s22 }
 0xca2   : > { %v2476_v38 = vpop.xlane.xlu0 %2475 }
 0xca3   : > { %4153 = vrcp.f32 %v2476_v38 }
 0xca4   : > { %4155 = vpow2.f32 %v2463_v52 }
 0xca5   : > { %4044 = vrot.lane.b32.xlu0 %v4053_v40, %s4292_s16  ;;  %4157 = vpow2.f32 %v2465_v57 }
 0xca6   : > { %4159 = vpow2.f32 %v2467_v23 }
 0xca7   : > { %4161 = vpow2.f32 %v2469_v53 }
 0xcad   : > { %v4154_v45 = vpop.eup %4153 }
 0xcae   : > { %v2504_v51 = vmul.f32 %v4154_v45, %v4146_v25  ;;  %v4852_v59 = vpop.eup %4155 }
 0xcaf   : > { %v4854_v63 = vpop.eup %4157  ;;  %v2483_v62 = vsel %vm1591_vm5, %v4852_v59, 0.0 }
 0xcb0   : > { %v2512_v54 = vpack.c.bf16 %v2504_v51, %v2504_v51  ;;  %v4856_v1 = vpop.eup %4159  ;;  %v2486_v2 = vsel %vm1591_vm5, %v4854_v63, 0.0 }
 0xcb1   : > { %v4862_v4 = vpop.eup %4161  ;;  %v2489_v5 = vsel %vm1591_vm5, %v4856_v1, 0.0 }
 0xcb2   : > { %3795 = vmatmul.mubr.msk.bf16.vlgmr.msra.gmra.mrb[64].mxu0 %vm1591_vm5, %v2512_v54  ;;  %v2492_v3 = vsel %vm1591_vm5, %v4862_v4, 0.0 }
 0xcb3   : > { %3806 = vmatprep.mubr.msk.bf16.mxu0 %vm4291_vm2, %v4290_v48 }
 0xcbf   : > { %v2473_v61 = vpop.xlane.xlu1 %2472 }
 0xcc0   : > { %4163 = vrcp.f32 %v2473_v61 }
 0xcc4   : > { %2487 = vadd.xlane.f32.xlu0 %v2486_v2  ;;  %2484 = vadd.xlane.f32.xlu1 %v2483_v62 }
 0xcc8   : > { %2493 = vadd.xlane.f32.xlu0 %v2492_v3  ;;  %2490 = vadd.xlane.f32.xlu1 %v2489_v5 }
 0xcca   : > { %v4164_v6 = vpop.eup %4163 }
 0xccb   : > { %v2503_v17 = vmul.f32 %v4164_v6, %v4148_v31 }
 0xccd   : > { %v2511_v18 = vpack.c.bf16 %v2503_v17, %v2503_v17 }
 0xccf   : > { %3789 = vmatmul.mubr.msk.bf16.vlgmr.msra.gmra.mrb[60].mxu1 %vm1591_vm5, %v2511_v18 }
 0xcd0   : > { %3799 = vmatpush3.bf16.msra.mxu1 %v2049_v19  ;;  %3800 = vmatprep.mubr.msk.bf16.mxu1 %vm4291_vm2, %v4290_v48 }
 0xcd1   : > { %3810 = vmatprep.subr.bf16.mxu1 %v4290_v48 }
 0xcd9   : > { %4059 = vrot.lane.b32.xlu1 %v4825_v24, %s4293_s21 }
 0xcde   : > { %4064 = vrot.lane.b32.xlu0 %v4053_v40, %s4293_s21 }
 0xd18   : > { %v2479_v20 = vpop.xlane.xlu1 %2478 }
 0xd19   : > { %4165 = vrcp.f32 %v2479_v20 }
 0xd1c   : > { %v2482_v21 = vpop.xlane.xlu0 %2481  ;;  %v4050_v25 = vpop.permute.xlu1 %4049 }
 0xd1d   : > { %4167 = vrcp.f32 %v2482_v21  ;;  %v4052_v31 = vunpack.i.h.bf16 %v4050_v25  ;;  %v4051_v44 = vunpack.i.l.bf16 %v4050_v25 }
 0xd1f   : > { %v2051_v0 = vpack.c.bf16 %v4052_v31, %v4051_v44  ;;  %v4099_v44 = vld [vmem:[%s4438_s20 + $0x70] sm:$0xff]  }
 0xd20   : > { %v4045_v26 = vpop.permute.xlu0 %4044  ;;  %v4055_v13 = vpop.permute.xlu1 %4054 }
 0xd21   : > { %v4047_v27 = vunpack.i.h.bf16 %v4045_v26  ;;  %v4046_v28 = vunpack.i.l.bf16 %v4045_v26  ;;  %v4057_v35 = vunpack.i.h.bf16 %v4055_v13  ;;  %v4056_v37 = vunpack.i.l.bf16 %v4055_v13 }
 0xd23   : > { %v4166_v29 = vpop.eup %4165  ;;  %v2050_v33 = vpack.c.bf16 %v4047_v27, %v4046_v28 }
 0xd24   : > { %v2505_v34 = vmul.f32 %v4166_v29, %v4831_v36  ;;  %v2052_v36 = vpack.c.bf16 %v4057_v35, %v4056_v37 }
 0xd25   : > { %3805 = vmatpush3.bf16.msra.mxu0 %v2050_v33 }
 0xd26   : > { %v2513_v15 = vpack.c.bf16 %v2505_v34, %v2505_v34  ;;  %3816 = vmatprep.subr.bf16.mxu0 %v4290_v48  ;;  %v4100_v34 = vld [vmem:[%s4438_s20 + $0x78] sm:$0xff]  }
 0xd27   : > { %v4168_v24 = vpop.eup %4167 }
 0xd28   : > { %v2506_v39 = vmul.f32 %v4168_v24, %v4835_v30  ;;  %3801 = vmatmul.mubr.msk.bf16.vlgmr.msra.gmra.mrb[64].mxu1 %vm1591_vm5, %v2513_v15 }
 0xd29   : > { %3811 = vmatpush3.bf16.msra.mxu1 %v2051_v0  ;;  %3812 = vmatprep.mubr.msk.bf16.mxu1 %vm4291_vm2, %v4290_v48 }
 0xd2a   : > { %v2514_v41 = vpack.c.bf16 %v2506_v39, %v2506_v39  ;;  %3822 = vmatprep.subr.bf16.mxu1 %v4290_v48 }
 0xd2c   : > { %3807 = vmatmul.mubr.msk.bf16.vlgmr.msra.gmra.mrb[68].mxu0 %vm1591_vm5, %v2514_v41 }
 0xd2d   : > { %3817 = vmatpush3.bf16.msra.mxu0 %v2052_v36  ;;  %3818 = vmatprep.mubr.msk.bf16.mxu0 %vm4291_vm2, %v4290_v48 }
 0xd2e   : > { %3828 = vmatprep.subr.bf16.mxu0 %v4290_v48 }
 0xd51   : > { %v2488_v32 = vpop.xlane.xlu0 %2487  ;;  %v2485_v30 = vpop.xlane.xlu1 %2484 }
 0xd52   : > { %4169 = vrcp.f32 %v2488_v32 }
 0xd53   : > { %4171 = vrcp.f32 %v2485_v30 }
 0xd55   : > { %v2494_v40 = vpop.xlane.xlu0 %2493  ;;  %v2491_v38 = vpop.xlane.xlu1 %2490 }
 0xd56   : > { %4173 = vrcp.f32 %v2494_v40 }
 0xd57   : > { %4175 = vrcp.f32 %v2491_v38 }
 0xd59   : > { %v4065_v43 = vpop.permute.xlu0 %4064  ;;  %v4060_v45 = vpop.permute.xlu1 %4059 }
 0xd5a   : > { %v4067_v49 = vunpack.i.h.bf16 %v4065_v43  ;;  %v4066_v50 = vunpack.i.l.bf16 %v4065_v43  ;;  %v4062_v52 = vunpack.i.h.bf16 %v4060_v45  ;;  %v4061_v56 = vunpack.i.l.bf16 %v4060_v45 }
 0xd5c   : > { %v4170_v47 = vpop.eup %4169  ;;  %v2054_v53 = vpack.c.bf16 %v4067_v49, %v4066_v50  ;;  %v2053_v2 = vpack.c.bf16 %v4062_v52, %v4061_v56 }
 0xd5d   : > { %v4172_v51 = vpop.eup %4171  ;;  %v2508_v54 = vmul.f32 %v4170_v47, %v4854_v63 }
 0xd5e   : > { %v2507_v57 = vmul.f32 %v4172_v51, %v4852_v59 }
 0xd5f   : > { %v2516_v22 = vpack.c.bf16 %v2508_v54, %v2508_v54 }
 0xd60   : > { %v4174_v23 = vpop.eup %4173  ;;  %v2515_v46 = vpack.c.bf16 %v2507_v57, %v2507_v57 }
 0xd61   : > { %v4176_v61 = vpop.eup %4175  ;;  %3819 = vmatmul.mubr.msk.bf16.vlgmr.msra.gmra.mrb[72].mxu0 %vm1591_vm5, %v2516_v22  ;;  %v2510_v62 = vmul.f32 %v4174_v23, %v4862_v4 }
 0xd62   : > { %3813 = vmatmul.mubr.msk.bf16.vlgmr.msra.gmra.mrb[68].mxu1 %vm1591_vm5, %v2515_v46  ;;  %3829 = vmatpush3.bf16.msra.mxu0 %v2054_v53  ;;  %v2509_v63 = vmul.f32 %v4176_v61, %v4856_v1 }
 0xd63   : > { %3823 = vmatpush3.bf16.msra.mxu1 %v2053_v2  ;;  %3824 = vmatprep.mubr.msk.bf16.mxu1 %vm4291_vm2, %v4290_v48  ;;  %v2518_v59 = vpack.c.bf16 %v2510_v62, %v2510_v62 }
 0xd64   : > { %3830 = vmatprep.mubr.msk.bf16.mxu0 %vm4291_vm2, %v4290_v48  ;;  %3834 = vmatprep.subr.bf16.mxu1 %v4290_v48  ;;  %v2517_v3 = vpack.c.bf16 %v2509_v63, %v2509_v63 }
 0xd65   : > { %3842 = vmatprep.subr.bf16.mxu0 %v4290_v48 }
 0xd69   : > { %3831 = vmatmul.mubr.msk.bf16.vlgmr.msra.gmra.mrb[76].mxu0 %vm1591_vm5, %v2518_v59 }
 0xd6a   : > { %3825 = vmatmul.mubr.msk.bf16.vlgmr.msra.gmra.mrb[72].mxu1 %vm1591_vm5, %v2517_v3  ;;  %3846 = vmatprep.mubr.msk.bf16.mxu0 %vm4291_vm2, %v4290_v48 }
 0xd6b   : > { %3838 = vmatprep.mubr.msk.bf16.mxu1 %vm4291_vm2, %v4290_v48  ;;  %3835 = vmatpush3.bf16.msra.mxu1 %v4099_v44  ;;  %v4101_v44 = vld [vmem:[%s4438_s20 + $0x80] sm:$0xff]  }
 0xd6c   : > { %3836 = vmatprep.subr.bf16.mxu1 %v4290_v48  ;;  %3843 = vmatpush3.bf16.msra.mxu0 %v4101_v44 }
 0xd6d   : > { %3844 = vmatprep.subr.bf16.mxu0 %v4290_v48 }
 0xd6f   : > { %3837 = vmatpush3.bf16.msra.mxu1 %v4100_v34 }
 0xd70   : > { %3850 = vmatprep.subr.bf16.mxu1 %v4290_v48 }
 0xd85   : > { %v2599_v1 = vpop.f32.mrb[64].mxu0 }
 0xd86   : > { %v3796_v4 = vpop.f32.mrb[65].mxu0 }
 0xd87   : > { %v2602_v5 = vpop.f32.mrb[66].mxu0 }
 0xd88   : > { %v3797_v6 = vpop.f32.mrb[67].mxu0 }
 0xda2   : > { %v2556_v9 = vpop.f32.mrb[60].mxu1 }
 0xda3   : > { %v3790_v16 = vpop.f32.mrb[61].mxu1 }
 0xda4   : > { %v2559_v17 = vpop.f32.mrb[62].mxu1 }
 0xda5   : > { %v3791_v18 = vpop.f32.mrb[63].mxu1 }
 0xdfb   : > { %v2642_v19 = vpop.f32.mrb[64].mxu1 }
 0xdfc   : > { %v3802_v20 = vpop.f32.mrb[65].mxu1 }
 0xdfd   : > { %v2645_v21 = vpop.f32.mrb[66].mxu1 }
 0xdfe   : > { %v3803_v25 = vpop.f32.mrb[67].mxu1 }
 0xdff   : > { %v2685_v26 = vpop.f32.mrb[68].mxu0 }
 0xe00   : > { %v4068_v27 = vpack.i.bf16 %v2685_v26, %v2642_v19  ;;  %v3808_v28 = vpop.f32.mrb[69].mxu0 }
 0xe01   : > { %v2688_v29 = vpop.f32.mrb[70].mxu0 }
 0xe02   : > { %v3809_v31 = vpop.f32.mrb[71].mxu0  ;;  %4069 = vrot.lane.b32.xlu1 %v4068_v27, %s4295_s27 }
 0xe34   : > { %v2771_v33 = vpop.f32.mrb[72].mxu0 }
 0xe35   : > { %v2728_v13 = vpop.f32.mrb[68].mxu1  ;;  %v3820_v15 = vpop.f32.mrb[73].mxu0 }
 0xe36   : > { %v4073_v24 = vpack.i.bf16 %v2771_v33, %v2728_v13  ;;  %v3814_v0 = vpop.f32.mrb[69].mxu1  ;;  %v2774_v35 = vpop.f32.mrb[74].mxu0  ;;  %v4102_v33 = vld [vmem:[%s4438_s20 + $0x88] sm:$0xff]  }
 0xe37   : > { %v2731_v37 = vpop.f32.mrb[70].mxu1  ;;  %v3821_v39 = vpop.f32.mrb[75].mxu0  ;;  %3845 = vmatpush3.bf16.msra.mxu0 %v4102_v33 }
 0xe38   : > { %4074 = vrot.lane.b32.xlu0 %v4073_v24, %s4296_s19  ;;  %v3815_v41 = vpop.f32.mrb[71].mxu1  ;;  %v4188_v39 = vld [vmem:[%s4449_s28 + $0x8] sm:$0xff] }
 0xe39   : > { %v2990_v41 = vrot.slane %v4188_v39, %v1715_v10  ;;  %v3008_v10 = vrot.slane %v4188_v39, %v4514_v11  ;;  %v3164_v44 = vrot.slane %v4188_v39, %v1780_v60  ;;  %v4298_v60 = vmov (!%p3478_p7), 0.0  }
 0xe3a   : > { %3858 = vmatprep.subr.bf16.mxu0 (!%p3478_p7), %v4298_v60 }
 0xe3c   : > { %v2857_v36 = vpop.f32.mrb[76].mxu0 }
 0xe3d   : > { %v2814_v32 = vpop.f32.mrb[72].mxu1  ;;  %v3832_v30 = vpop.f32.mrb[77].mxu0 }
 0xe3e   : > { %v4078_v40 = vpack.i.bf16 %v2857_v36, %v2814_v32  ;;  %v3826_v38 = vpop.f32.mrb[73].mxu1  ;;  %v2860_v43 = vpop.f32.mrb[78].mxu0  ;;  %v414_v32 = vld [vmem:[%s4449_s28 + $0x10] sm:$0x3] }
 0xe3f   : > { %v2817_v45 = vpop.f32.mrb[74].mxu1  ;;  %v3833_v47 = vpop.f32.mrb[79].mxu0 }
 0xe40   : > { %4079 = vrot.lane.b32.xlu1 %v4078_v40, %s4297_s23  ;;  %v3827_v49 = vpop.f32.mrb[75].mxu1  ;;  %v2996_v40 = vrot.slane %v414_v32, %v4514_v11 }
 0xe74   : > { %v4070_v50 = vpop.permute.xlu1 %4069 }
 0xe75   : > { %v4072_v54 = vunpack.i.h.bf16 %v4070_v50  ;;  %v4071_v52 = vunpack.i.l.bf16 %v4070_v50 }
 0xe77   : > { %v2888_v23 = vsel %vm731_vm3, %v2599_v1, %v4072_v54  ;;  %v2887_v53 = vsel %vm731_vm3, %v2556_v9, %v4071_v52  ;;  %v2902_v1 = vrot.slane %v4768_v8, %v1699_v42  ;;  %v4104_v54 = vld [vmem:[%s4438_s20 + $0x98] sm:$0xff]  }
 0xeaa   : > { %v4075_v51 = vpop.permute.xlu0 %4074 }
 0xeab   : > { %v4077_v56 = vunpack.i.h.bf16 %v4075_v51  ;;  %v4076_v57 = vunpack.i.l.bf16 %v4075_v51  ;;  %v4103_v51 = vld [vmem:[%s4438_s20 + $0x90] sm:$0xff]  }
 0xead   : > { %v2890_v2 = vsel %vm1591_vm5, %v2888_v23, %v4077_v56  ;;  %v2889_v62 = vsel %vm1591_vm5, %v2887_v53, %v4076_v57 }
 0xeb2   : > { %v4080_v22 = vpop.permute.xlu1 %4079 }
 0xeb3   : > { %v4082_v46 = vunpack.i.h.bf16 %v4080_v22  ;;  %v4081_v61 = vunpack.i.l.bf16 %v4080_v22 }
 0xeb5   : > { %v2892_v63 = vsel %vm1594_vm6, %v2890_v2, %v4082_v46  ;;  %v2891_v59 = vsel %vm1594_vm6, %v2889_v62, %v4081_v61  ;;  %v3076_v62 = vrot.slane %v4188_v39, %v4517_v12 }
 0xeb6   : > { %v2893_v3 = vpack.c.bf16 %v2892_v63, %v2891_v59 }
 0xeb8   : > { %3839 = vmatmul.mubr.msk.bf16.vlgmr.msra.gmra.mrb[76].mxu1 %vm416_vm1, %v2893_v3 }
 0xeb9   : > { %3854 = vmatprep.mubr.msk.bf16.mxu1 %vm4291_vm2, %v4290_v48  ;;  %3851 = vmatpush3.bf16.msra.mxu1 %v4103_v51 }
 0xeba   : > { %3852 = vmatprep.subr.bf16.mxu1 %v4290_v48 }
 0xebd   : > { %3853 = vmatpush3.bf16.msra.mxu1 %v4104_v54 }
 0xf8b   : > { %v2952_v4 = vpop.f32.mrb[76].mxu1 }
 0xf8c   : > { %v2953_v5 = vadd.f32 %v2952_v4, %v2902_v1  ;;  %v3840_v6 = vpop.f32.mrb[77].mxu1 }
 0xf8d   : > { %v2955_v9 = vpop.f32.mrb[78].mxu1 }
 0xf8e   : > { %v4924_v16 = vadd.f32 %v2953_v5, %v4685_v7  ;;  %v2956_v17 = vadd.f32 %v2955_v9, %v2902_v1  ;;  %v3841_v18 = vpop.f32.mrb[79].mxu1 }
 0xf90   : > { %v4927_v19 = vadd.f32 %v2956_v17, %v4687_v14  ;;  %v2961_v20 = vsel %vm416_vm1, %v4924_v16, 0.0 }
 0xf91   : > { %2962 = vadd.xlane.f32.xlu0 %v2961_v20 }
 0xf92   : > { %v2964_v42 = vsel %vm416_vm1, %v4927_v19, 0.0 }
 0xf93   : > { %2965 = vadd.xlane.f32.xlu1 %v2964_v42 }
0x101e   : > { %v2963_v8 = vpop.xlane.xlu0 %2962 }
0x101f   : > { %v2967_v21 = vmul.f32 0.03125, %v2963_v8 }
0x1020   : > { %v2966_v25 = vpop.xlane.xlu1 %2965 }
0x1021   : > { %v2969_v7 = vsub.f32 %v4924_v16, %v2967_v21  ;;  %v2968_v26 = vmul.f32 0.03125, %v2966_v25 }
0x1023   : > { %v2970_v27 = vsub.f32 %v4927_v19, %v2968_v26  ;;  %v2971_v14 = vmul.f32 %v2969_v7, %v2969_v7 }
0x1025   : > { %v2973_v28 = vsel %vm416_vm1, %v2971_v14, 0.0  ;;  %v2972_v29 = vmul.f32 %v2970_v27, %v2970_v27 }
0x1026   : > { %2974 = vadd.xlane.f32.xlu0 %v2973_v28 }
0x1027   : > { %v2976_v31 = vsel %vm416_vm1, %v2972_v29, 0.0 }
0x102a   : > { %2977 = vadd.xlane.f32.xlu0 %v2976_v31 }
0x10b3   : > { %v2975_v34 = vpop.xlane.xlu0 %2974 }
0x10b4   : > { %v2979_v13 = vmul.f32 0.03125, %v2975_v34  ;;  %v3170_v34 = vrot.slane %v414_v32, %v4517_v12  ;;  %v4190_v12 = vld [vmem:[%s5024_s6 + $0x8] sm:$0xff] (!%p3478_p7)  }
0x10b6   : > { %v2981_v15 = vadd.f32 1e-05, %v2979_v13 }
0x10b7   : > { %v2978_v24 = vpop.xlane.xlu0 %2977 }
0x10b8   : > { %4177 = vrsqrt.f32 %v2981_v15  ;;  %v2980_v0 = vmul.f32 0.03125, %v2978_v24 }
0x10ba   : > { %v2982_v35 = vadd.f32 1e-05, %v2980_v0 }
0x10bc   : > { %4179 = vrsqrt.f32 %v2982_v35 }
0x10c2   : > { %v4178_v37 = vpop.eup %4177 }
0x10c3   : > { %v2985_v36 = vmul.f32 %v4178_v37, %v2969_v7 }
0x10c5   : > { %v2991_v38 = vmul.f32 %v2990_v41, %v2985_v36  ;;  %v3479_v36 = vld [vmem:[%s5025_s7] ss:$0 sm:$0xff] (!%p3478_p7) }
0x10c6   : > { %v4180_v30 = vpop.eup %4179 }
0x10c7   : > { %v2986_v43 = vmul.f32 %v4180_v30, %v2970_v27  ;;  %v2997_v47 = vadd.f32 %v2996_v40, %v2991_v38 }
0x10c9   : > { %v2992_v45 = vmul.f32 %v2990_v41, %v2986_v43 }
0x10cb   : > { %v2998_v49 = vadd.f32 %v2996_v40, %v2992_v45 }
0x10cd   : > { %v2999_v50 = vpack.c.bf16 %v2998_v49, %v2997_v47  ;;  %v3250_v47 = vand.u32 (!%p3478_p7), 127, %v444_v55 }
0x10cf   : > { %3847 = vmatmul.mubr.msk.bf16.vlgmr.msra.gmra.mrb[80].mxu0 %vm416_vm1, %v2999_v50 }
0x10d0   : > { %3859 = vmatpush3.bf16.msra.mxu0 (!%p3478_p7), %v4189_v58  ;;  %3862 = vmatprep.mubr.msk.bf16.mxu0 (!%p3478_p7), %vm4299_vm7, %v4298_v60 }
0x10d1   : > { %3860 = vmatprep.subr.bf16.mxu0 (!%p3478_p7), %v4298_v60 }
0x10d4   : > { %3861 = vmatpush3.bf16.msra.mxu0 (!%p3478_p7), %v4190_v12 }
0x11a2   : > { %v3058_v52 = vpop.f32.mrb[80].mxu0 }
0x11a3   : > { %v3059_v56 = vadd.f32 %v3058_v52, %v3008_v10  ;;  %v3848_v57 = vpop.f32.mrb[81].mxu0 }
0x11a4   : > { %v3061_v22 = vpop.f32.mrb[82].mxu0 }
0x11a5   : > { %v3062_v23 = vadd.f32 %v3061_v22, %v3008_v10  ;;  %v3849_v53 = vpop.f32.mrb[83].mxu0  ;;  %v3065_v46 = vmax.f32 %v3059_v56, 0.0 }
0x11a7   : > { %v3066_v61 = vmax.f32 %v3062_v23, 0.0 }
0x11a9   : > { %v3067_v2 = vpack.c.bf16 %v3066_v61, %v3065_v46 }
0x11ab   : > { %3855 = vmatmul.mubr.msk.bf16.vlgmr.msra.gmra.mrb[80].mxu1 %vm416_vm1, %v3067_v2 }
0x127e   : > { %v3126_v63 = vpop.f32.mrb[80].mxu1 }
0x127f   : > { %v3127_v59 = vadd.f32 %v3126_v63, %v3076_v62  ;;  %v3856_v48 = vpop.f32.mrb[81].mxu1 }
0x1280   : > { %v3129_v3 = vpop.f32.mrb[82].mxu1 }
0x1281   : > { %v3130_v1 = vadd.f32 %v3129_v3, %v3076_v62  ;;  %v3857_v4 = vpop.f32.mrb[83].mxu1  ;;  %v3133_v11 = vadd.f32 %v3127_v59, %v4924_v16 }
0x1283   : > { %v3135_v5 = vsel %vm416_vm1, %v3133_v11, 0.0  ;;  %v3134_v6 = vadd.f32 %v3130_v1, %v4927_v19 }
0x1284   : > { %3136 = vadd.xlane.f32.xlu0 %v3135_v5 }
0x1285   : > { %v3138_v9 = vsel %vm416_vm1, %v3134_v6, 0.0 }
0x1286   : > { %3139 = vadd.xlane.f32.xlu1 %v3138_v9 }
0x1311   : > { %v3137_v17 = vpop.xlane.xlu0 %3136 }
0x1312   : > { %v3141_v18 = vmul.f32 0.03125, %v3137_v17 }
0x1313   : > { %v3140_v20 = vpop.xlane.xlu1 %3139 }
0x1314   : > { %v3143_v42 = vsub.f32 %v3133_v11, %v3141_v18  ;;  %v3142_v8 = vmul.f32 0.03125, %v3140_v20 }
0x1316   : > { %v3144_v21 = vsub.f32 %v3134_v6, %v3142_v8  ;;  %v3145_v25 = vmul.f32 %v3143_v42, %v3143_v42 }
0x1318   : > { %v3147_v7 = vsel %vm416_vm1, %v3145_v25, 0.0  ;;  %v3146_v26 = vmul.f32 %v3144_v21, %v3144_v21 }
0x1319   : > { %3148 = vadd.xlane.f32.xlu0 %v3147_v7 }
0x131a   : > { %v3150_v16 = vsel %vm416_vm1, %v3146_v26, 0.0 }
0x131b   : > { %3151 = vadd.xlane.f32.xlu1 %v3150_v16 }
0x13a6   : > { %v3149_v27 = vpop.xlane.xlu0 %3148 }
0x13a7   : > { %v3153_v19 = vmul.f32 0.03125, %v3149_v27 }
0x13a8   : > { %v3152_v14 = vpop.xlane.xlu1 %3151 }
0x13a9   : > { %v3155_v28 = vadd.f32 1e-05, %v3153_v19  ;;  %v3154_v29 = vmul.f32 0.03125, %v3152_v14 }
0x13ab   : > { %4181 = vrsqrt.f32 %v3155_v28  ;;  %v3156_v31 = vadd.f32 1e-05, %v3154_v29 }
0x13ad   : > { %4183 = vrsqrt.f32 %v3156_v31 }
0x13b5   : > { %v4182_v33 = vpop.eup %4181 }
0x13b6   : > { %v3159_v13 = vmul.f32 %v4182_v33, %v3143_v42 }
0x13b7   : > { %v4184_v15 = vpop.eup %4183 }
0x13b8   : > { %v3165_v24 = vmul.f32 %v3164_v44, %v3159_v13  ;;  %v3160_v0 = vmul.f32 %v4184_v15, %v3144_v21  ;;  %3178 = sbr.rel (%p3478_p7) target bundleno = 5713 (0x1651), region = 64 }
0x13ba   : > { %v3171_v35 = vadd.f32 %v3170_v34, %v3165_v24  ;;  %v3166_v37 = vmul.f32 %v3164_v44, %v3160_v0 }
0x13bc   : > { %3173 = vst.msk [vmem:[#allocation2] sm:$0xff] %vm416_vm1, %v3171_v35  ;;  %v3172_v41 = vadd.f32 %v3170_v34, %v3166_v37 }
0x13be   : > { %3174 = vst.msk [vmem:[#allocation2 + $0x8] sm:$0xff] %vm416_vm1, %v3172_v41  ;;  %v3179_v39 = vpack.c.bf16 (!%p3478_p7), %v3172_v41, %v3171_v35 }
0x13c0   : > { %3863 = vmatmul.mubr.msk.bf16.vlgmr.msra.gmra.mrb[0].mxu0 %vm416_vm1, %v3179_v39 }
0x1493   : > { %v3240_v32 = vpop.f32.mrb[0].mxu0 }
0x1494   : > { %v3241_v30 = vadd.f32 %v3479_v36, %v3240_v32  ;;  %v3864_v40 = vpop.f32.mrb[1].mxu0 }
0x1495   : > { %v3243_v38 = vpop.f32.mrb[2].mxu0 }
0x1496   : > { %3247 = vst [vmem:[#allocation6] sm:$0xff] %v3241_v30  ;;  %v3244_v43 = vadd.f32 %v3479_v36, %v3243_v38  ;;  %3251 = vmax.xlane.f32.xlu0 %v3241_v30  ;;  %v3865_v45 = vpop.f32.mrb[3].mxu0 }
0x1498   : > { %3248 = vst [vmem:[#allocation6 + $0x8] sm:$0xff] %v3244_v43 }
0x149a   : > { %3253 = vmax.xlane.f32.xlu0 %v3244_v43 }
0x1523   : > { %v3252_v49 = vpop.xlane.xlu0 %3251 }
0x1524   : > { %vm3255_vm8 = vcmp.eq.f32.partialorder %v3241_v30, %v3252_v49 }
0x1525   : > { %v3257_v50 = vsel %vm3255_vm8, %v3250_v47, 1073741824 }
0x1526   : > { %v3260_v51 = vshra.s32 %v3257_v50, 16  ;;  %v3259_v22 = vand.u32 65535, %v3257_v50 }
0x1527   : > { %v3254_v54 = vpop.xlane.xlu0 %3253 }
0x1528   : > { %vm3256_vm9 = vcmp.eq.f32.partialorder %v3244_v43, %v3254_v54  ;;  %v3262_v10 = vcvt.s32.f32 %v3260_v51  ;;  %v3261_v46 = vcvt.s32.f32 %v3259_v22 }
0x1529   : > { %v3258_v52 = vsel %vm3256_vm9, %v3250_v47, 1073741824 }
0x152a   : > { %3263 = vmin.xlane.f32.xlu1 %v3262_v10  ;;  %v3274_v56 = vshra.s32 %v3258_v52, 16  ;;  %v3273_v23 = vand.u32 65535, %v3258_v52 }
0x152c   : > { %v3276_v57 = vcvt.s32.f32 %v3274_v56  ;;  %v3275_v2 = vcvt.s32.f32 %v3273_v23 }
0x152e   : > { %3277 = vmin.xlane.f32.xlu1 %v3276_v57 }
0x15b7   : > { %v3264_v53 = vpop.xlane.xlu1 %3263 }
0x15b8   : > { %vm3265_vm10 = vcmp.eq.f32.partialorder %v3262_v10, %v3264_v53  ;;  %v3270_v63 = vcvt.f32.s32 %v3264_v53 }
0x15b9   : > { %v3266_v61 = vsel %vm3265_vm10, %v3261_v46, inf }
0x15ba   : > { %3267 = vmin.xlane.f32.xlu0 %v3266_v61  ;;  %v3271_v48 = vshll.u32 %v3270_v63, 16 }
0x15bb   : > { %v3278_v55 = vpop.xlane.xlu1 %3277 }
0x15bc   : > { %vm3279_vm11 = vcmp.eq.f32.partialorder %v3276_v57, %v3278_v55  ;;  %v3284_v3 = vcvt.f32.s32 %v3278_v55 }
0x15bd   : > { %v3280_v62 = vsel %vm3279_vm11, %v3275_v2, inf }
0x15be   : > { %3281 = vmin.xlane.f32.xlu1 %v3280_v62  ;;  %v3285_v5 = vshll.u32 %v3284_v3, 16 }
0x1647   : > { %v3268_v59 = vpop.xlane.xlu0 %3267 }
0x1648   : > { %v3269_v1 = vcvt.f32.s32 %v3268_v59 }
0x164a   : > { %v3272_v4 = vadd.s32 %v3271_v48, %v3269_v1 }
0x164b   : > { %v3282_v11 = vpop.xlane.xlu1 %3281 }
0x164c   : > { %3288 = vst.msk [vmem:[%s5027_s9] sm:$0xff] %vm3287_vm12, %v3272_v4  ;;  %v3283_v6 = vcvt.f32.s32 %v3282_v11 }
0x164e   : > { %v3286_v9 = vadd.s32 %v3285_v5, %v3283_v6 }
0x1650   : > { %3289 = vst.msk [vmem:[%s5027_s9 + $0x8] sm:$0xff] %vm3287_vm12, %v3286_v9 }
0x1651 PF: > { %p3881_p4 = scmp.eq.s32.totalorder %s4371_s13, 1  ;;  %s4300_s23 = smov [#allocation6]  }
0x1652   : > { %s3296_s18 = sshll.u32 %s4300_s23, 4  ;;  %s3297_s18 = int_to_ptr.vmem [resolvable:$true] %s3296_s18 }
0x1653   : > { %s4221_s24 = scalar_lea.vmem %s3297_s18, 256  ;;  %p4228_p12 = scmp.lt.s32.totalorder %s3297_s18, %s3297_s18 }
0x1654   : > { %p4222_p5 = scmp.ne.s32.totalorder %s3297_s18, %s4221_s24  ;;  %p4229_p0 = scmp.lt.s32.totalorder %s4221_s24, %s4221_s24 }
0x1656   : > { %p4223_p6 = pnand %p4222_p5, %p3881_p4  ;;  %p4230_p1 = por %p4229_p0, %p4228_p12 }
0x1658   : > { %p4224_p10 = pneg %p4223_p6 }
0x165a   : > { %p4231_p2 = pnand %p4230_p1, %p4224_p10 }
0x165c   : > { %4234 = shalt.err (!%p4231_p2)
}
0x165d   : > { %s4235_s20 = scalar_lea.hbm %s5026_s8, 256 }
0x165e   : > { %p4236_p11 = scmp.ne.s32.totalorder %s5026_s8, %s4235_s20  ;;  %p4241_p9 = scmp.lt.u32.totalorder %s4235_s20, %s5026_s8 }
0x1660   : > { %p4237_p13 = pnand %p4236_p11, %p3881_p4 }
0x1662   : > { %p4238_p3 = pneg %p4237_p13 }
0x1664   : > { %p4243_p8 = pnand %p4241_p9, %p4238_p3 }
0x1666   : > { %4246 = shalt.err (!%p4243_p8)
}
0x1667   : > { %s4301_s21 = smov 128  }
0x1668   : > { %3873 = dma.vmem_to_hbm [thread:$0]  (%p3881_p4), %s3297_s18, 256, %s5026_s8, [#allocation5], %s4301_s21, %s4301_s21, %s4295_s27  }
0x1669   : > { %4268 = dma.done.wait (%p3881_p4), [#allocation5], 256  }
0x166a   : > { %4270 = vsyncadd (%p3881_p4), [#allocation5], 4294967040 }
0x166b PF: > { %p21_p7 = scmp.ge.s32.totalorder %s4374_s14, 4   ;;  %s5031_s30 = smov %s4277_s10 }
0x166c   : > { %s5032_s10 = smov %s4281_s11  ;;  %s5033_s11 = smov %s4384_s17 }
0x166d   : > { %s5034_s12 = smov %s4374_s14  ;;  %23 = sbr.rel (!%p21_p7) target bundleno = 4 (0x4), region = 117 }
0x1674   :  { %3318 = vsyncpa [#allocation4], 1 }
0x1675   :  { %3320 = vsyncpa [#allocation4 + $0x1], 1 }
0x1676   :  { %3321 = vsyncpa [#allocation5], 1 }
0x1677   :  { %3323 = vsyncpa [#allocation5 + $0x1], 1 }

</bundles_post_ra>
